<compile_context>
chip_gen: v6e
topology: v6e:2x2x1
jax: 0.10.0
libtpu: 0.0.40
codegen_flags: <defaults>
</compile_context>

<pallas_src>
import functools

import jax
import jax.numpy as jnp
from jax.experimental import pallas as pl
from jax.experimental.pallas import tpu as pltpu

BATCH_SIZE = 2
MAX_LEN = 8            # L
GLOVE_DIM = 32         # text feature dim
COVAREP_DIM = 16       # audio feature dim
HIDDEN_TEXT = 16       # text_params[1]  -> H = 2*16 = 32
HIDDEN_AUDIO = 8       # audio_params[1] -> D = 2*8  = 16
HIDDEN_FUSION = 8      # fusion_params[1]-> W = 2*8  = 16

H = 2 * HIDDEN_TEXT
D = 2 * HIDDEN_AUDIO
W = 2 * HIDDEN_FUSION
_W = W + H + D          # deep_fused input size (= 64)
CAT = H + D + W         # dense input size      (= 64)
FEAT = GLOVE_DIM + COVAREP_DIM
LANES = 128
OUT_LANES = 128

# ----------------------------------------------------------------------------
# Unpacked (PyTorch-like) parameter definitions, used only by init_params.
# ----------------------------------------------------------------------------
PARAM_SPECS = [
    # text encoder surrogate (Text_Encoder)   TODO(synk): pretrained BiRNN replaced by tanh projection + masked attention pooling
    ("We_t", (GLOVE_DIM, H), 0.1), ("be_t", (1, H), 0.01), ("u_t", (1, H), 0.1),
    ("Wdt", (H, H), 0.1), ("bdt", (1, H), 0.01),
    ("Wlt", (1, H), 0.1), ("blt", (1, 1), 0.01),
    # audio encoder surrogate (Audio_Encoder) TODO(synk): pretrained BiRNN replaced by tanh projection + masked attention pooling
    ("We_a", (COVAREP_DIM, D), 0.1), ("be_a", (1, D), 0.01), ("u_a", (1, D), 0.1),
    ("Wda", (D, D), 0.1), ("bda", (1, D), 0.01),
    ("Wla", (1, D), 0.1), ("bla", (1, 1), 0.01),
    # Attn_Fusion / Mul_Fusion surrogates
    ("Wp", (D, H), 0.1), ("Wm", (H, D), 0.1),
    # fusion_rnn surrogate (Text_RNN)         TODO(synk): recurrence replaced by projection + masked attention pooling
    ("Wf", (2 * D, W), 0.1), ("bf", (1, W), 0.01), ("u_f", (1, W), 0.1),
    # deep_audio
    ("da1_w", (D, D), 0.1), ("da1_b", (1, D), 0.01),
    ("da2_w", (D, D), 0.1), ("da2_b", (1, D), 0.01),
    # deep_text
    ("dt1_w", (H, H), 0.1), ("dt1_b", (1, H), 0.01),
    ("dt2_w", (H, H), 0.1), ("dt2_b", (1, H), 0.01),
    # deep_fused
    ("df1_w", (_W, _W), 0.1), ("df1_b", (1, _W), 0.01),
    ("df2_w", (_W, W), 0.1), ("df2_b", (1, W), 0.01),
    ("df3_w", (W, W), 0.1), ("df3_b", (1, W), 0.01),
    # dense
    ("d1_w", (CAT, CAT), 0.1), ("d1_b", (1, CAT), 0.01),
    ("d2_w", (CAT, CAT // 2), 0.1), ("d2_b", (1, CAT // 2), 0.01),
    ("d3_w", (CAT // 2, CAT // 2), 0.1), ("d3_b", (1, CAT // 2), 0.01),
    ("d4_w", (CAT // 2, H), 0.1), ("d4_b", (1, H), 0.01),
    ("d5_w", (H, D), 0.1), ("d5_b", (1, D), 0.01),
    # fusion_mapping
    ("map_w", (1, D), 0.1), ("map_b", (1, 1), 0.01),
]

# ----------------------------------------------------------------------------
# Static packed-slab layouts (row offsets are compile-time constants).
# ----------------------------------------------------------------------------
_MAT_LAYOUT = [
    ("enc",    FEAT, H + D),          # block_diag(We_t, We_a)
    ("fuse",   H + D, H + D),         # [[0, Wm], [Wp, 0]]
    ("wf",     2 * D, W),             # Wf
    ("merge1", H + D, 2 * (H + D)),   # [[Wdt,0,dt1,0],[0,Wda,0,da1]]
    ("merge2", H + D, H + D),         # block_diag(dt2_w, da2_w)
    ("df1",    _W, _W),
    ("df2",    _W, W),
    ("df3",    W, W),
    ("d1",     CAT, CAT),
    ("d2",     CAT, CAT // 2),
    ("d3",     CAT // 2, CAT // 2),
    ("d4",     CAT // 2, H),
    ("d5",     H, D),
]
_MAT_OFF = {}
_o = 0
for _n, _r, _c in _MAT_LAYOUT:
    _MAT_OFF[_n] = (_o, _r, _c)
    _o += _r
MAT_TOTAL_ROWS = _o  # 592 (multiple of 8)

_ROW_LAYOUT = [
    ("b_enc", H + D),
    ("u_t", H), ("u_a", D), ("u_f", W),
    ("b_f", W),
    ("b_merge1", 2 * (H + D)), ("b_merge2", H + D),
    ("b_df1", _W), ("b_df2", W), ("b_df3", W),
    ("b_d1", CAT), ("b_d2", CAT // 2), ("b_d3", CAT // 2),
    ("b_d4", H), ("b_d5", D),
    ("w_lt", H), ("w_la", D), ("w_map", D),
    ("sc", 3),                         # [map_b, bla, blt] at lanes 0,1,2
]
_ROW_IDX = {}
for _i, (_n, _c) in enumerate(_ROW_LAYOUT):
    _ROW_IDX[_n] = (_i, _c)
N_ROWS = len(_ROW_LAYOUT)  # 19


# ----------------------------------------------------------------------------
# Fused forward kernel
# ----------------------------------------------------------------------------
def _fused_kernel(feat_ref, len_ref, mat_ref, rows_ref, out_ref):
    f32 = jnp.float32
    B, L = BATCH_SIZE, MAX_LEN

    # Point-of-use static slices of the two packed slabs (no upfront hoist).
    def mat(name):
        o, r, c = _MAT_OFF[name]
        return mat_ref[o:o + r, 0:c]

    def row(name):
        i, c = _ROW_IDX[name]
        return rows_ref[i:i + 1, 0:c]

    def dense(x, wn, bn, act=None):
        y = jnp.dot(x, mat(wn), preferred_element_type=f32) + row(bn)
        if act == "relu":
            y = jnp.maximum(y, 0.0)
        elif act == "tanh":
            y = jnp.tanh(y)
        return y

    def head(x, wn):
        # 1-wide linear head on the VPU (row multiply + lane reduce), no MXU.
        return jnp.sum(x * row(wn), axis=-1, keepdims=True)

    # ---- (B, L) validity mask from the (B, 1) lengths column ----
    iota_l = jax.lax.broadcasted_iota(jnp.int32, (B, L), 1)
    mask = (iota_l < len_ref[...]).astype(f32)                     # (B, L)

    def attn_pool(x, u_name):
        # x: (B, L, N) -> (B, N); masked attention pooling, EUP reciprocal.
        u = row(u_name)                                            # (1, N)
        s = jnp.sum(x * u[None, :, :], axis=-1)                    # (B, L)
        s = jnp.where(mask > 0, s, -1e9)
        s = s - jnp.max(s, axis=-1, keepdims=True)
        a = jnp.exp(s) * mask
        a = a * pl.reciprocal(jnp.sum(a, axis=-1, keepdims=True) + 1e-9,
                              approx=True)
        return jnp.sum(a[:, :, None] * x, axis=1)                  # (B, N)

    # ---- text + audio encoders: one block-diagonal MXU pass ----
    feats2 = feat_ref[...].reshape(B * L, FEAT)                    # [glove | cov]
    hidden = dense(feats2, "enc", "b_enc", "tanh")                 # (B*L, H+D)
    ht2 = hidden[:, 0:H]                                           # hidden_t
    ha2 = hidden[:, H:H + D]                                       # hidden_a
    T = attn_pool(ht2.reshape(B, L, H), "u_t")                     # (B, H)
    A = attn_pool(ha2.reshape(B, L, D), "u_a")                     # (B, D)

    # ---- Attn_Fusion (Wp) + Mul_Fusion (Wm) projections: one merged pass ----
    fuse = jnp.dot(hidden, mat("fuse"), preferred_element_type=f32)
    ha_p = fuse[:, 0:H]                                            # hidden_a @ Wp
    ht_m = fuse[:, H:H + D]                                        # hidden_t @ Wm

    # ---- cross attention, B=2 unrolled into plain 2-D dots ----
    inv_sqrt_h = H ** -0.5
    f_blocks = []
    for b in range(B):
        ht_b = ht2[b * L:(b + 1) * L, :]                           # (L, H)
        hp_b = ha_p[b * L:(b + 1) * L, :]                          # (L, H)
        ha_b = ha2[b * L:(b + 1) * L, :]                           # (L, D)
        m_b = mask[b:b + 1, :]                                     # (1, L)
        s_b = jnp.dot(ht_b, hp_b.T, preferred_element_type=f32) * inv_sqrt_h
        s_b = jnp.where(m_b > 0, s_b, -1e9)
        s_b = s_b - jnp.max(s_b, axis=-1, keepdims=True)
        p_b = jnp.exp(s_b) * m_b
        p_b = p_b * pl.reciprocal(jnp.sum(p_b, axis=-1, keepdims=True) + 1e-9,
                                  approx=True)
        f_blocks.append(jnp.dot(p_b, ha_b, preferred_element_type=f32))  # (L, D)
    f2 = jnp.concatenate(f_blocks, axis=0)                         # (B*L, D)
    m2 = ht_m * ha2                                                # (B*L, D)

    # fused_i = cat(f_i, m_i); zero_pad identity (L == MAX_LEN); fusion_rnn
    # surrogate as ONE matmul on the lane-concatenated input.
    proj_f = dense(jnp.concatenate([f2, m2], axis=-1), "wf", "b_f", "tanh")
    F = attn_pool(proj_f.reshape(B, L, W), "u_f")                  # (B, W)

    # ---- deep_T, deep_A, deep_text[0], deep_audio[0]: one merged pass ----
    ta = jnp.concatenate([T, A], axis=-1)                          # (B, H+D)
    m1 = dense(ta, "merge1", "b_merge1", "relu")                   # (B, 2*(H+D))
    deep_T = m1[:, 0:H]
    deep_A = m1[:, H:H + D]
    # ---- deep_text[1], deep_audio[1]: one merged pass ----
    m2_out = dense(m1[:, H + D:], "merge2", "b_merge2", "relu")    # (B, H+D)
    deep_T_fusion = m2_out[:, 0:H]
    deep_A_fusion = m2_out[:, H:H + D]

    logits_text = head(deep_T, "w_lt")                             # (B, 1), bias later
    logits_audio = head(deep_A, "w_la")

    # ---- deep_fused(cat(deep_A_fusion, deep_T_fusion, F)) ----
    mid_f = jnp.concatenate([deep_A_fusion, deep_T_fusion, F], axis=-1)
    hf = dense(mid_f, "df1", "b_df1", "relu")
    hf = dense(hf, "df2", "b_df2", "relu")
    deep_F = dense(hf, "df3", "b_df3", "relu")                     # (B, W)

    # ---- dense(cat(deep_A, deep_T, deep_F)) ----
    r = jnp.concatenate([deep_A, deep_T, deep_F], axis=-1)         # (B, CAT)
    r = dense(r, "d1", "b_d1", "relu")
    r = dense(r, "d2", "b_d2", "relu")
    r = dense(r, "d3", "b_d3", "relu")
    r = dense(r, "d4", "b_d4", "relu")
    rep = dense(r, "d5", "b_d5", "relu")                           # (B, D)

    logits_fusion = head(rep, "w_map")                             # (B, 1), bias later

    # ---- pack heads into one lane-dense (B, 128) store; the scalar head
    #      biases [map_b, bla, blt] sit at lanes 0/1/2 of the "sc" slab row.
    lane = jax.lax.broadcasted_iota(jnp.int32, (B, OUT_LANES), 1)
    packed = jnp.where(lane == 0, logits_fusion, 0.0)
    packed = jnp.where(lane == 1, logits_audio, packed)
    packed = jnp.where(lane == 2, logits_text, packed)
    i_sc, _ = _ROW_IDX["sc"]
    out_ref[...] = packed + rows_ref[i_sc:i_sc + 1, :]


# ----------------------------------------------------------------------------
# Host-side parameter packing into two lane-dense slabs
# ----------------------------------------------------------------------------
def pack_params(params):
    f32 = jnp.float32
    z = lambda r, c: jnp.zeros((r, c), f32)

    def blkdiag(a, b):
        ra, ca = a.shape
        rb, cb = b.shape
        return jnp.concatenate([
            jnp.concatenate([a, z(ra, cb)], axis=1),
            jnp.concatenate([z(rb, ca), b], axis=1)], axis=0)

    w_enc = blkdiag(params["We_t"], params["We_a"])                       # (48,48)
    w_fuse = jnp.concatenate([
        jnp.concatenate([z(H, H), params["Wm"]], axis=1),                 # ht rows
        jnp.concatenate([params["Wp"], z(D, D)], axis=1)], axis=0)        # ha rows
    w_merge1 = jnp.concatenate([
        jnp.concatenate([params["Wdt"], z(H, D), params["dt1_w"], z(H, D)], axis=1),
        jnp.concatenate([z(D, H), params["Wda"], z(D, H), params["da1_w"]], axis=1)],
        axis=0)                                                           # (48,96)
    w_merge2 = blkdiag(params["dt2_w"], params["da2_w"])                  # (48,48)

    mats = {
        "enc": w_enc, "fuse": w_fuse, "wf": params["Wf"],
        "merge1": w_merge1, "merge2": w_merge2,
        "df1": params["df1_w"], "df2": params["df2_w"], "df3": params["df3_w"],
        "d1": params["d1_w"], "d2": params["d2_w"], "d3": params["d3_w"],
        "d4": params["d4_w"], "d5": params["d5_w"],
    }
    mat_list = []
    for name, r, c in _MAT_LAYOUT:
        m = mats[name]
        assert m.shape == (r, c), (name, m.shape, (r, c))
        mat_list.append(jnp.pad(m, ((0, 0), (0, LANES - c))))
    mat_slab = jnp.concatenate(mat_list, axis=0)                          # (592,128)

    def rowcat(vecs):
        v = jnp.concatenate([x.reshape(1, -1) for x in vecs], axis=1)
        return jnp.pad(v, ((0, 0), (0, LANES - v.shape[1])))

    rows = {
        "b_enc": rowcat([params["be_t"], params["be_a"]]),
        "u_t": rowcat([params["u_t"]]),
        "u_a": rowcat([params["u_a"]]),
        "u_f": rowcat([params["u_f"]]),
        "b_f": rowcat([params["bf"]]),
        "b_merge1": rowcat([params["bdt"], params["bda"],
                            params["dt1_b"], params["da1_b"]]),
        "b_merge2": rowcat([params["dt2_b"], params["da2_b"]]),
        "b_df1": rowcat([params["df1_b"]]),
        "b_df2": rowcat([params["df2_b"]]),
        "b_df3": rowcat([params["df3_b"]]),
        "b_d1": rowcat([params["d1_b"]]),
        "b_d2": rowcat([params["d2_b"]]),
        "b_d3": rowcat([params["d3_b"]]),
        "b_d4": rowcat([params["d4_b"]]),
        "b_d5": rowcat([params["d5_b"]]),
        "w_lt": rowcat([params["Wlt"]]),
        "w_la": rowcat([params["Wla"]]),
        "w_map": rowcat([params["map_w"]]),
        "sc": rowcat([params["map_b"], params["bla"], params["blt"]]),
    }
    rows_slab = jnp.concatenate([rows[n] for n, _ in _ROW_LAYOUT], axis=0)  # (19,128)
    return mat_slab, rows_slab


# ----------------------------------------------------------------------------
# Wrapper
# ----------------------------------------------------------------------------
def hierarchy_attn_forward(params, covarep, glove, lengths):
    B, L, _ = glove.shape
    mat_slab, rows_slab = pack_params(params)
    feats = jnp.concatenate([glove, covarep], axis=-1)             # (B, L, FEAT)
    lengths_col = lengths.astype(jnp.int32).reshape(B, 1)

    def full_spec(shape):
        nd = len(shape)
        return pl.BlockSpec(shape, lambda i, _nd=nd: (0,) * _nd)

    # TODO(synk): for large batched workloads on v7x, add a leading "parallel"
    # grid axis over batch chunks so the second TensorCore is used.
    out = pl.pallas_call(
        _fused_kernel,
        out_shape=jax.ShapeDtypeStruct((B, OUT_LANES), jnp.float32),
        grid=(1,),
        in_specs=[full_spec(feats.shape),
                  full_spec(lengths_col.shape),
                  full_spec(mat_slab.shape),
                  full_spec(rows_slab.shape)],
        out_specs=pl.BlockSpec((B, OUT_LANES), lambda i: (0, 0)),
        compiler_params=pltpu.CompilerParams(
            dimension_semantics=("arbitrary",)),
    )(feats, lengths_col, mat_slab, rows_slab)

    logits_fusion = out[:, 0:1]
    logits_audio = out[:, 1:2]
    logits_text = out[:, 2:3]
    return logits_fusion, logits_audio, logits_text


# ----------------------------------------------------------------------------
# Parameters (deterministic synthetic init)
# ----------------------------------------------------------------------------
def init_params(key):
    keys = jax.random.split(key, len(PARAM_SPECS))
    params = {}
    for (name, shape, scale), k in zip(PARAM_SPECS, keys):
        params[name] = scale * jax.random.normal(k, shape, jnp.float32)
    return params


# ----------------------------------------------------------------------------
if __name__ == "__main__":
    key = jax.random.PRNGKey(0)
    k_p, k_cov, k_glove = jax.random.split(key, 3)

    params = init_params(k_p)
    covarep = jax.random.normal(k_cov, (BATCH_SIZE, MAX_LEN, COVAREP_DIM), jnp.float32)
    glove = jax.random.normal(k_glove, (BATCH_SIZE, MAX_LEN, GLOVE_DIM), jnp.float32)
    lengths = jnp.array([MAX_LEN, MAX_LEN - 2], dtype=jnp.int32)

    fwd = jax.jit(functools.partial(hierarchy_attn_forward, params))
    logits_fusion, logits_audio, logits_text = fwd(covarep, glove, lengths)
    jax.block_until_ready((logits_fusion, logits_audio, logits_text))

    assert logits_fusion.shape == (BATCH_SIZE, 1)
    assert logits_audio.shape == (BATCH_SIZE, 1)
    assert logits_text.shape == (BATCH_SIZE, 1)
    assert bool(jnp.all(jnp.isfinite(logits_fusion)))
    assert bool(jnp.all(jnp.isfinite(logits_audio)))
    assert bool(jnp.all(jnp.isfinite(logits_text)))

    print("KERNEL_OK")
</pallas_src>

<mosaic_0001>
module attributes {stable_mosaic.version = 11 : i64} {
  func.func @_fused_kernel(%arg0: i32, %arg1: memref<2x8x48xf32, #tpu.memory_space<vmem>>, %arg2: memref<2x1xi32, #tpu.memory_space<vmem>>, %arg3: memref<592x128xf32, #tpu.memory_space<vmem>>, %arg4: memref<19x128xf32, #tpu.memory_space<vmem>>, %arg5: memref<2x128xf32, #tpu.memory_space<vmem>>) attributes {dimension_semantics = [#tpu.dimension_semantics<arbitrary>], iteration_bounds = array<i64: 1>, scalar_prefetch = 0 : i64, scratch_operands = 0 : i64, tpu.core_type = #tpu.core_type<tc>, window_params = [{pipeline_mode = #tpu.pipeline_mode<synchronous>, transform_indices = @transform_0, window_bounds = array<i64: 2, 8, 48>}, {pipeline_mode = #tpu.pipeline_mode<synchronous>, transform_indices = @transform_1, window_bounds = array<i64: 2, 1>}, {pipeline_mode = #tpu.pipeline_mode<synchronous>, transform_indices = @transform_2, window_bounds = array<i64: 592, 128>}, {pipeline_mode = #tpu.pipeline_mode<synchronous>, transform_indices = @transform_3, window_bounds = array<i64: 19, 128>}, {pipeline_mode = #tpu.pipeline_mode<synchronous>, transform_indices = @transform_4, window_bounds = array<i64: 2, 128>}]} {
    %0 = tpu.iota {dimensions = array<i32: 1>} : vector<2x8xi32>
    %c0 = arith.constant 0 : index
    %c0_0 = arith.constant 0 : index
    %1 = vector.load %arg2[%c0, %c0_0] : memref<2x1xi32, #tpu.memory_space<vmem>>, vector<2x1xi32>
    %2 = vector.broadcast %1 : vector<2x1xi32> to vector<2x8xi32>
    %3 = arith.cmpi slt, %0, %2 : vector<2x8xi32>
    %4 = arith.extui %3 : vector<2x8xi1> to vector<2x8xi32>
    %5 = arith.sitofp %4 : vector<2x8xi32> to vector<2x8xf32>
    %c0_1 = arith.constant 0 : index
    %c0_2 = arith.constant 0 : index
    %c0_3 = arith.constant 0 : index
    %6 = vector.load %arg1[%c0_1, %c0_2, %c0_3] : memref<2x8x48xf32, #tpu.memory_space<vmem>>, vector<2x8x48xf32>
    %7 = vector.shape_cast %6 : vector<2x8x48xf32> to vector<16x48xf32>
    %c0_4 = arith.constant 0 : index
    %c0_5 = arith.constant 0 : index
    %8 = vector.load %arg3[%c0_4, %c0_5] : memref<592x128xf32, #tpu.memory_space<vmem>>, vector<48x48xf32>
    %cst = arith.constant dense<0.000000e+00> : vector<16x48xf32>
    %9 = tpu.matmul %7, %8, %cst {dimension_numbers = #tpu.dot_dimension_numbers<[1], [0], [0], [1], [0, 0, 1, 1], [], []>} : vector<16x48xf32>, vector<48x48xf32>, vector<16x48xf32> -> vector<16x48xf32>
    %c0_6 = arith.constant 0 : index
    %c0_7 = arith.constant 0 : index
    %10 = vector.load %arg4[%c0_6, %c0_7] : memref<19x128xf32, #tpu.memory_space<vmem>>, vector<1x48xf32>
    %11 = vector.broadcast %10 : vector<1x48xf32> to vector<16x48xf32>
    %12 = arith.addf %9, %11 : vector<16x48xf32>
    %13 = math.tanh %12 : vector<16x48xf32>
    %14 = vector.extract_strided_slice %13 {offsets = [0, 0], sizes = [16, 32], strides = [1, 1]} : vector<16x48xf32> to vector<16x32xf32>
    %15 = vector.extract_strided_slice %13 {offsets = [0, 32], sizes = [16, 16], strides = [1, 1]} : vector<16x48xf32> to vector<16x16xf32>
    %16 = vector.shape_cast %14 : vector<16x32xf32> to vector<2x8x32xf32>
    %c1 = arith.constant 1 : index
    %c0_8 = arith.constant 0 : index
    %17 = vector.load %arg4[%c1, %c0_8] : memref<19x128xf32, #tpu.memory_space<vmem>>, vector<1x32xf32>
    %18 = vector.shape_cast %17 : vector<1x32xf32> to vector<1x1x32xf32>
    %19 = vector.broadcast %18 : vector<1x1x32xf32> to vector<2x8x32xf32>
    %20 = arith.mulf %16, %19 : vector<2x8x32xf32>
    %cst_9 = arith.constant dense<0.000000e+00> : vector<2x8xf32>
    %21 = vector.multi_reduction <add>, %20, %cst_9 [2] : vector<2x8x32xf32> to vector<2x8xf32>
    %cst_10 = arith.constant 0.000000e+00 : f32
    %22 = vector.broadcast %cst_10 : f32 to vector<2x8xf32>
    %23 = arith.cmpf ogt, %5, %22 : vector<2x8xf32>
    %cst_11 = arith.constant -1.000000e+09 : f32
    %24 = vector.broadcast %cst_11 : f32 to vector<2x8xf32>
    %25 = arith.select %23, %21, %24 : vector<2x8xi1>, vector<2x8xf32>
    %cst_12 = arith.constant dense<0xFF800000> : vector<2xf32>
    %26 = vector.multi_reduction <maximumf>, %25, %cst_12 [1] : vector<2x8xf32> to vector<2xf32>
    %27 = vector.shape_cast %26 : vector<2xf32> to vector<2x1xf32>
    %28 = vector.broadcast %27 : vector<2x1xf32> to vector<2x8xf32>
    %29 = arith.subf %25, %28 : vector<2x8xf32>
    %30 = math.exp %29 : vector<2x8xf32>
    %31 = arith.mulf %30, %5 : vector<2x8xf32>
    %cst_13 = arith.constant dense<0.000000e+00> : vector<2xf32>
    %32 = vector.multi_reduction <add>, %31, %cst_13 [1] : vector<2x8xf32> to vector<2xf32>
    %33 = vector.shape_cast %32 : vector<2xf32> to vector<2x1xf32>
    %cst_14 = arith.constant 9.99999971E-10 : f32
    %34 = vector.broadcast %cst_14 : f32 to vector<2x1xf32>
    %35 = arith.addf %33, %34 : vector<2x1xf32>
    %36 = tpu.reciprocal %35 {approx = true} : vector<2x1xf32> -> vector<2x1xf32>
    %37 = vector.broadcast %36 : vector<2x1xf32> to vector<2x8xf32>
    %38 = arith.mulf %31, %37 : vector<2x8xf32>
    %39 = vector.shape_cast %38 : vector<2x8xf32> to vector<2x8x1xf32>
    %40 = vector.broadcast %39 : vector<2x8x1xf32> to vector<2x8x32xf32>
    %41 = arith.mulf %40, %16 : vector<2x8x32xf32>
    %cst_15 = arith.constant dense<0.000000e+00> : vector<2x32xf32>
    %42 = vector.multi_reduction <add>, %41, %cst_15 [1] : vector<2x8x32xf32> to vector<2x32xf32>
    %43 = vector.shape_cast %15 : vector<16x16xf32> to vector<2x8x16xf32>
    %c2 = arith.constant 2 : index
    %c0_16 = arith.constant 0 : index
    %44 = vector.load %arg4[%c2, %c0_16] : memref<19x128xf32, #tpu.memory_space<vmem>>, vector<1x16xf32>
    %45 = vector.shape_cast %44 : vector<1x16xf32> to vector<1x1x16xf32>
    %46 = vector.broadcast %45 : vector<1x1x16xf32> to vector<2x8x16xf32>
    %47 = arith.mulf %43, %46 : vector<2x8x16xf32>
    %cst_17 = arith.constant dense<0.000000e+00> : vector<2x8xf32>
    %48 = vector.multi_reduction <add>, %47, %cst_17 [2] : vector<2x8x16xf32> to vector<2x8xf32>
    %cst_18 = arith.constant 0.000000e+00 : f32
    %49 = vector.broadcast %cst_18 : f32 to vector<2x8xf32>
    %50 = arith.cmpf ogt, %5, %49 : vector<2x8xf32>
    %cst_19 = arith.constant -1.000000e+09 : f32
    %51 = vector.broadcast %cst_19 : f32 to vector<2x8xf32>
    %52 = arith.select %50, %48, %51 : vector<2x8xi1>, vector<2x8xf32>
    %cst_20 = arith.constant dense<0xFF800000> : vector<2xf32>
    %53 = vector.multi_reduction <maximumf>, %52, %cst_20 [1] : vector<2x8xf32> to vector<2xf32>
    %54 = vector.shape_cast %53 : vector<2xf32> to vector<2x1xf32>
    %55 = vector.broadcast %54 : vector<2x1xf32> to vector<2x8xf32>
    %56 = arith.subf %52, %55 : vector<2x8xf32>
    %57 = math.exp %56 : vector<2x8xf32>
    %58 = arith.mulf %57, %5 : vector<2x8xf32>
    %cst_21 = arith.constant dense<0.000000e+00> : vector<2xf32>
    %59 = vector.multi_reduction <add>, %58, %cst_21 [1] : vector<2x8xf32> to vector<2xf32>
    %60 = vector.shape_cast %59 : vector<2xf32> to vector<2x1xf32>
    %cst_22 = arith.constant 9.99999971E-10 : f32
    %61 = vector.broadcast %cst_22 : f32 to vector<2x1xf32>
    %62 = arith.addf %60, %61 : vector<2x1xf32>
    %63 = tpu.reciprocal %62 {approx = true} : vector<2x1xf32> -> vector<2x1xf32>
    %64 = vector.broadcast %63 : vector<2x1xf32> to vector<2x8xf32>
    %65 = arith.mulf %58, %64 : vector<2x8xf32>
    %66 = vector.shape_cast %65 : vector<2x8xf32> to vector<2x8x1xf32>
    %67 = vector.broadcast %66 : vector<2x8x1xf32> to vector<2x8x16xf32>
    %68 = arith.mulf %67, %43 : vector<2x8x16xf32>
    %cst_23 = arith.constant dense<0.000000e+00> : vector<2x16xf32>
    %69 = vector.multi_reduction <add>, %68, %cst_23 [1] : vector<2x8x16xf32> to vector<2x16xf32>
    %c48 = arith.constant 48 : index
    %c0_24 = arith.constant 0 : index
    %70 = vector.load %arg3[%c48, %c0_24] : memref<592x128xf32, #tpu.memory_space<vmem>>, vector<48x48xf32>
    %cst_25 = arith.constant dense<0.000000e+00> : vector<16x48xf32>
    %71 = tpu.matmul %13, %70, %cst_25 {dimension_numbers = #tpu.dot_dimension_numbers<[1], [0], [0], [1], [0, 0, 1, 1], [], []>} : vector<16x48xf32>, vector<48x48xf32>, vector<16x48xf32> -> vector<16x48xf32>
    %72 = vector.extract_strided_slice %71 {offsets = [0, 0], sizes = [16, 32], strides = [1, 1]} : vector<16x48xf32> to vector<16x32xf32>
    %73 = vector.extract_strided_slice %71 {offsets = [0, 32], sizes = [16, 16], strides = [1, 1]} : vector<16x48xf32> to vector<16x16xf32>
    %74 = vector.extract_strided_slice %14 {offsets = [0, 0], sizes = [8, 32], strides = [1, 1]} : vector<16x32xf32> to vector<8x32xf32>
    %75 = vector.extract_strided_slice %72 {offsets = [0, 0], sizes = [8, 32], strides = [1, 1]} : vector<16x32xf32> to vector<8x32xf32>
    %76 = vector.extract_strided_slice %15 {offsets = [0, 0], sizes = [8, 16], strides = [1, 1]} : vector<16x16xf32> to vector<8x16xf32>
    %77 = vector.extract_strided_slice %5 {offsets = [0, 0], sizes = [1, 8], strides = [1, 1]} : vector<2x8xf32> to vector<1x8xf32>
    %78 = tpu.transpose %75, [1, 0] : vector<8x32xf32> -> vector<32x8xf32>
    %cst_26 = arith.constant dense<0.000000e+00> : vector<8x8xf32>
    %79 = tpu.matmul %74, %78, %cst_26 {dimension_numbers = #tpu.dot_dimension_numbers<[1], [0], [0], [1], [0, 0, 1, 1], [], []>} : vector<8x32xf32>, vector<32x8xf32>, vector<8x8xf32> -> vector<8x8xf32>
    %cst_27 = arith.constant 0.176776692 : f32
    %80 = vector.broadcast %cst_27 : f32 to vector<8x8xf32>
    %81 = arith.mulf %79, %80 : vector<8x8xf32>
    %cst_28 = arith.constant 0.000000e+00 : f32
    %82 = vector.broadcast %cst_28 : f32 to vector<1x8xf32>
    %83 = arith.cmpf ogt, %77, %82 : vector<1x8xf32>
    %cst_29 = arith.constant -1.000000e+09 : f32
    %84 = vector.shape_cast %83 : vector<1x8xi1> to vector<1x8xi1>
    %85 = vector.broadcast %84 : vector<1x8xi1> to vector<8x8xi1>
    %86 = vector.broadcast %cst_29 : f32 to vector<8x8xf32>
    %87 = arith.select %85, %81, %86 : vector<8x8xi1>, vector<8x8xf32>
    %cst_30 = arith.constant dense<0xFF800000> : vector<8xf32>
    %88 = vector.multi_reduction <maximumf>, %87, %cst_30 [1] : vector<8x8xf32> to vector<8xf32>
    %89 = vector.shape_cast %88 : vector<8xf32> to vector<8x1xf32>
    %90 = vector.broadcast %89 : vector<8x1xf32> to vector<8x8xf32>
    %91 = arith.subf %87, %90 : vector<8x8xf32>
    %92 = math.exp %91 : vector<8x8xf32>
    %93 = vector.broadcast %77 : vector<1x8xf32> to vector<8x8xf32>
    %94 = arith.mulf %92, %93 : vector<8x8xf32>
    %cst_31 = arith.constant dense<0.000000e+00> : vector<8xf32>
    %95 = vector.multi_reduction <add>, %94, %cst_31 [1] : vector<8x8xf32> to vector<8xf32>
    %96 = vector.shape_cast %95 : vector<8xf32> to vector<8x1xf32>
    %cst_32 = arith.constant 9.99999971E-10 : f32
    %97 = vector.broadcast %cst_32 : f32 to vector<8x1xf32>
    %98 = arith.addf %96, %97 : vector<8x1xf32>
    %99 = tpu.reciprocal %98 {approx = true} : vector<8x1xf32> -> vector<8x1xf32>
    %100 = vector.broadcast %99 : vector<8x1xf32> to vector<8x8xf32>
    %101 = arith.mulf %94, %100 : vector<8x8xf32>
    %cst_33 = arith.constant dense<0.000000e+00> : vector<8x16xf32>
    %102 = tpu.matmul %101, %76, %cst_33 {dimension_numbers = #tpu.dot_dimension_numbers<[1], [0], [0], [1], [0, 0, 1, 1], [], []>} : vector<8x8xf32>, vector<8x16xf32>, vector<8x16xf32> -> vector<8x16xf32>
    %103 = vector.extract_strided_slice %14 {offsets = [8, 0], sizes = [8, 32], strides = [1, 1]} : vector<16x32xf32> to vector<8x32xf32>
    %104 = vector.extract_strided_slice %72 {offsets = [8, 0], sizes = [8, 32], strides = [1, 1]} : vector<16x32xf32> to vector<8x32xf32>
    %105 = vector.extract_strided_slice %15 {offsets = [8, 0], sizes = [8, 16], strides = [1, 1]} : vector<16x16xf32> to vector<8x16xf32>
    %106 = vector.extract_strided_slice %5 {offsets = [1, 0], sizes = [1, 8], strides = [1, 1]} : vector<2x8xf32> to vector<1x8xf32>
    %107 = tpu.transpose %104, [1, 0] : vector<8x32xf32> -> vector<32x8xf32>
    %cst_34 = arith.constant dense<0.000000e+00> : vector<8x8xf32>
    %108 = tpu.matmul %103, %107, %cst_34 {dimension_numbers = #tpu.dot_dimension_numbers<[1], [0], [0], [1], [0, 0, 1, 1], [], []>} : vector<8x32xf32>, vector<32x8xf32>, vector<8x8xf32> -> vector<8x8xf32>
    %cst_35 = arith.constant 0.176776692 : f32
    %109 = vector.broadcast %cst_35 : f32 to vector<8x8xf32>
    %110 = arith.mulf %108, %109 : vector<8x8xf32>
    %cst_36 = arith.constant 0.000000e+00 : f32
    %111 = vector.broadcast %cst_36 : f32 to vector<1x8xf32>
    %112 = arith.cmpf ogt, %106, %111 : vector<1x8xf32>
    %cst_37 = arith.constant -1.000000e+09 : f32
    %113 = vector.shape_cast %112 : vector<1x8xi1> to vector<1x8xi1>
    %114 = vector.broadcast %113 : vector<1x8xi1> to vector<8x8xi1>
    %115 = vector.broadcast %cst_37 : f32 to vector<8x8xf32>
    %116 = arith.select %114, %110, %115 : vector<8x8xi1>, vector<8x8xf32>
    %cst_38 = arith.constant dense<0xFF800000> : vector<8xf32>
    %117 = vector.multi_reduction <maximumf>, %116, %cst_38 [1] : vector<8x8xf32> to vector<8xf32>
    %118 = vector.shape_cast %117 : vector<8xf32> to vector<8x1xf32>
    %119 = vector.broadcast %118 : vector<8x1xf32> to vector<8x8xf32>
    %120 = arith.subf %116, %119 : vector<8x8xf32>
    %121 = math.exp %120 : vector<8x8xf32>
    %122 = vector.broadcast %106 : vector<1x8xf32> to vector<8x8xf32>
    %123 = arith.mulf %121, %122 : vector<8x8xf32>
    %cst_39 = arith.constant dense<0.000000e+00> : vector<8xf32>
    %124 = vector.multi_reduction <add>, %123, %cst_39 [1] : vector<8x8xf32> to vector<8xf32>
    %125 = vector.shape_cast %124 : vector<8xf32> to vector<8x1xf32>
    %cst_40 = arith.constant 9.99999971E-10 : f32
    %126 = vector.broadcast %cst_40 : f32 to vector<8x1xf32>
    %127 = arith.addf %125, %126 : vector<8x1xf32>
    %128 = tpu.reciprocal %127 {approx = true} : vector<8x1xf32> -> vector<8x1xf32>
    %129 = vector.broadcast %128 : vector<8x1xf32> to vector<8x8xf32>
    %130 = arith.mulf %123, %129 : vector<8x8xf32>
    %cst_41 = arith.constant dense<0.000000e+00> : vector<8x16xf32>
    %131 = tpu.matmul %130, %105, %cst_41 {dimension_numbers = #tpu.dot_dimension_numbers<[1], [0], [0], [1], [0, 0, 1, 1], [], []>} : vector<8x8xf32>, vector<8x16xf32>, vector<8x16xf32> -> vector<8x16xf32>
    %132 = tpu.concatenate %102, %131 in 0 : vector<8x16xf32>, vector<8x16xf32> -> vector<16x16xf32>
    %133 = arith.mulf %73, %15 : vector<16x16xf32>
    %134 = tpu.concatenate %132, %133 in 1 : vector<16x16xf32>, vector<16x16xf32> -> vector<16x32xf32>
    %c96 = arith.constant 96 : index
    %c0_42 = arith.constant 0 : index
    %135 = vector.load %arg3[%c96, %c0_42] : memref<592x128xf32, #tpu.memory_space<vmem>>, vector<32x16xf32>
    %cst_43 = arith.constant dense<0.000000e+00> : vector<16x16xf32>
    %136 = tpu.matmul %134, %135, %cst_43 {dimension_numbers = #tpu.dot_dimension_numbers<[1], [0], [0], [1], [0, 0, 1, 1], [], []>} : vector<16x32xf32>, vector<32x16xf32>, vector<16x16xf32> -> vector<16x16xf32>
    %c4 = arith.constant 4 : index
    %c0_44 = arith.constant 0 : index
    %137 = vector.load %arg4[%c4, %c0_44] : memref<19x128xf32, #tpu.memory_space<vmem>>, vector<1x16xf32>
    %138 = vector.broadcast %137 : vector<1x16xf32> to vector<16x16xf32>
    %139 = arith.addf %136, %138 : vector<16x16xf32>
    %140 = math.tanh %139 : vector<16x16xf32>
    %141 = vector.shape_cast %140 : vector<16x16xf32> to vector<2x8x16xf32>
    %c3 = arith.constant 3 : index
    %c0_45 = arith.constant 0 : index
    %142 = vector.load %arg4[%c3, %c0_45] : memref<19x128xf32, #tpu.memory_space<vmem>>, vector<1x16xf32>
    %143 = vector.shape_cast %142 : vector<1x16xf32> to vector<1x1x16xf32>
    %144 = vector.broadcast %143 : vector<1x1x16xf32> to vector<2x8x16xf32>
    %145 = arith.mulf %141, %144 : vector<2x8x16xf32>
    %cst_46 = arith.constant dense<0.000000e+00> : vector<2x8xf32>
    %146 = vector.multi_reduction <add>, %145, %cst_46 [2] : vector<2x8x16xf32> to vector<2x8xf32>
    %cst_47 = arith.constant 0.000000e+00 : f32
    %147 = vector.broadcast %cst_47 : f32 to vector<2x8xf32>
    %148 = arith.cmpf ogt, %5, %147 : vector<2x8xf32>
    %cst_48 = arith.constant -1.000000e+09 : f32
    %149 = vector.broadcast %cst_48 : f32 to vector<2x8xf32>
    %150 = arith.select %148, %146, %149 : vector<2x8xi1>, vector<2x8xf32>
    %cst_49 = arith.constant dense<0xFF800000> : vector<2xf32>
    %151 = vector.multi_reduction <maximumf>, %150, %cst_49 [1] : vector<2x8xf32> to vector<2xf32>
    %152 = vector.shape_cast %151 : vector<2xf32> to vector<2x1xf32>
    %153 = vector.broadcast %152 : vector<2x1xf32> to vector<2x8xf32>
    %154 = arith.subf %150, %153 : vector<2x8xf32>
    %155 = math.exp %154 : vector<2x8xf32>
    %156 = arith.mulf %155, %5 : vector<2x8xf32>
    %cst_50 = arith.constant dense<0.000000e+00> : vector<2xf32>
    %157 = vector.multi_reduction <add>, %156, %cst_50 [1] : vector<2x8xf32> to vector<2xf32>
    %158 = vector.shape_cast %157 : vector<2xf32> to vector<2x1xf32>
    %cst_51 = arith.constant 9.99999971E-10 : f32
    %159 = vector.broadcast %cst_51 : f32 to vector<2x1xf32>
    %160 = arith.addf %158, %159 : vector<2x1xf32>
    %161 = tpu.reciprocal %160 {approx = true} : vector<2x1xf32> -> vector<2x1xf32>
    %162 = vector.broadcast %161 : vector<2x1xf32> to vector<2x8xf32>
    %163 = arith.mulf %156, %162 : vector<2x8xf32>
    %164 = vector.shape_cast %163 : vector<2x8xf32> to vector<2x8x1xf32>
    %165 = vector.broadcast %164 : vector<2x8x1xf32> to vector<2x8x16xf32>
    %166 = arith.mulf %165, %141 : vector<2x8x16xf32>
    %cst_52 = arith.constant dense<0.000000e+00> : vector<2x16xf32>
    %167 = vector.multi_reduction <add>, %166, %cst_52 [1] : vector<2x8x16xf32> to vector<2x16xf32>
    %168 = tpu.concatenate %42, %69 in 1 : vector<2x32xf32>, vector<2x16xf32> -> vector<2x48xf32>
    %c128 = arith.constant 128 : index
    %c0_53 = arith.constant 0 : index
    %169 = vector.load %arg3[%c128, %c0_53] : memref<592x128xf32, #tpu.memory_space<vmem>>, vector<48x96xf32>
    %cst_54 = arith.constant dense<0.000000e+00> : vector<2x96xf32>
    %170 = tpu.matmul %168, %169, %cst_54 {dimension_numbers = #tpu.dot_dimension_numbers<[1], [0], [0], [1], [0, 0, 1, 1], [], []>} : vector<2x48xf32>, vector<48x96xf32>, vector<2x96xf32> -> vector<2x96xf32>
    %c5 = arith.constant 5 : index
    %c0_55 = arith.constant 0 : index
    %171 = vector.load %arg4[%c5, %c0_55] : memref<19x128xf32, #tpu.memory_space<vmem>>, vector<1x96xf32>
    %172 = vector.broadcast %171 : vector<1x96xf32> to vector<2x96xf32>
    %173 = arith.addf %170, %172 : vector<2x96xf32>
    %cst_56 = arith.constant 0.000000e+00 : f32
    %174 = vector.broadcast %cst_56 : f32 to vector<2x96xf32>
    %175 = arith.maximumf %173, %174 : vector<2x96xf32>
    %176 = vector.extract_strided_slice %175 {offsets = [0, 0], sizes = [2, 32], strides = [1, 1]} : vector<2x96xf32> to vector<2x32xf32>
    %177 = vector.extract_strided_slice %175 {offsets = [0, 32], sizes = [2, 16], strides = [1, 1]} : vector<2x96xf32> to vector<2x16xf32>
    %178 = vector.extract_strided_slice %175 {offsets = [0, 48], sizes = [2, 48], strides = [1, 1]} : vector<2x96xf32> to vector<2x48xf32>
    %c176 = arith.constant 176 : index
    %c0_57 = arith.constant 0 : index
    %179 = vector.load %arg3[%c176, %c0_57] : memref<592x128xf32, #tpu.memory_space<vmem>>, vector<48x48xf32>
    %cst_58 = arith.constant dense<0.000000e+00> : vector<2x48xf32>
    %180 = tpu.matmul %178, %179, %cst_58 {dimension_numbers = #tpu.dot_dimension_numbers<[1], [0], [0], [1], [0, 0, 1, 1], [], []>} : vector<2x48xf32>, vector<48x48xf32>, vector<2x48xf32> -> vector<2x48xf32>
    %c6 = arith.constant 6 : index
    %c0_59 = arith.constant 0 : index
    %181 = vector.load %arg4[%c6, %c0_59] : memref<19x128xf32, #tpu.memory_space<vmem>>, vector<1x48xf32>
    %182 = vector.broadcast %181 : vector<1x48xf32> to vector<2x48xf32>
    %183 = arith.addf %180, %182 : vector<2x48xf32>
    %cst_60 = arith.constant 0.000000e+00 : f32
    %184 = vector.broadcast %cst_60 : f32 to vector<2x48xf32>
    %185 = arith.maximumf %183, %184 : vector<2x48xf32>
    %186 = vector.extract_strided_slice %185 {offsets = [0, 0], sizes = [2, 32], strides = [1, 1]} : vector<2x48xf32> to vector<2x32xf32>
    %187 = vector.extract_strided_slice %185 {offsets = [0, 32], sizes = [2, 16], strides = [1, 1]} : vector<2x48xf32> to vector<2x16xf32>
    %c15 = arith.constant 15 : index
    %c0_61 = arith.constant 0 : index
    %188 = vector.load %arg4[%c15, %c0_61] : memref<19x128xf32, #tpu.memory_space<vmem>>, vector<1x32xf32>
    %189 = vector.broadcast %188 : vector<1x32xf32> to vector<2x32xf32>
    %190 = arith.mulf %176, %189 : vector<2x32xf32>
    %cst_62 = arith.constant dense<0.000000e+00> : vector<2xf32>
    %191 = vector.multi_reduction <add>, %190, %cst_62 [1] : vector<2x32xf32> to vector<2xf32>
    %192 = vector.shape_cast %191 : vector<2xf32> to vector<2x1xf32>
    %c16 = arith.constant 16 : index
    %c0_63 = arith.constant 0 : index
    %193 = vector.load %arg4[%c16, %c0_63] : memref<19x128xf32, #tpu.memory_space<vmem>>, vector<1x16xf32>
    %194 = vector.broadcast %193 : vector<1x16xf32> to vector<2x16xf32>
    %195 = arith.mulf %177, %194 : vector<2x16xf32>
    %cst_64 = arith.constant dense<0.000000e+00> : vector<2xf32>
    %196 = vector.multi_reduction <add>, %195, %cst_64 [1] : vector<2x16xf32> to vector<2xf32>
    %197 = vector.shape_cast %196 : vector<2xf32> to vector<2x1xf32>
    %198 = tpu.concatenate %187, %186, %167 in 1 : vector<2x16xf32>, vector<2x32xf32>, vector<2x16xf32> -> vector<2x64xf32>
    %c224 = arith.constant 224 : index
    %c0_65 = arith.constant 0 : index
    %199 = vector.load %arg3[%c224, %c0_65] : memref<592x128xf32, #tpu.memory_space<vmem>>, vector<64x64xf32>
    %cst_66 = arith.constant dense<0.000000e+00> : vector<2x64xf32>
    %200 = tpu.matmul %198, %199, %cst_66 {dimension_numbers = #tpu.dot_dimension_numbers<[1], [0], [0], [1], [0, 0, 1, 1], [], []>} : vector<2x64xf32>, vector<64x64xf32>, vector<2x64xf32> -> vector<2x64xf32>
    %c7 = arith.constant 7 : index
    %c0_67 = arith.constant 0 : index
    %201 = vector.load %arg4[%c7, %c0_67] : memref<19x128xf32, #tpu.memory_space<vmem>>, vector<1x64xf32>
    %202 = vector.broadcast %201 : vector<1x64xf32> to vector<2x64xf32>
    %203 = arith.addf %200, %202 : vector<2x64xf32>
    %cst_68 = arith.constant 0.000000e+00 : f32
    %204 = vector.broadcast %cst_68 : f32 to vector<2x64xf32>
    %205 = arith.maximumf %203, %204 : vector<2x64xf32>
    %c288 = arith.constant 288 : index
    %c0_69 = arith.constant 0 : index
    %206 = vector.load %arg3[%c288, %c0_69] : memref<592x128xf32, #tpu.memory_space<vmem>>, vector<64x16xf32>
    %cst_70 = arith.constant dense<0.000000e+00> : vector<2x16xf32>
    %207 = tpu.matmul %205, %206, %cst_70 {dimension_numbers = #tpu.dot_dimension_numbers<[1], [0], [0], [1], [0, 0, 1, 1], [], []>} : vector<2x64xf32>, vector<64x16xf32>, vector<2x16xf32> -> vector<2x16xf32>
    %c8 = arith.constant 8 : index
    %c0_71 = arith.constant 0 : index
    %208 = vector.load %arg4[%c8, %c0_71] : memref<19x128xf32, #tpu.memory_space<vmem>>, vector<1x16xf32>
    %209 = vector.broadcast %208 : vector<1x16xf32> to vector<2x16xf32>
    %210 = arith.addf %207, %209 : vector<2x16xf32>
    %cst_72 = arith.constant 0.000000e+00 : f32
    %211 = vector.broadcast %cst_72 : f32 to vector<2x16xf32>
    %212 = arith.maximumf %210, %211 : vector<2x16xf32>
    %c352 = arith.constant 352 : index
    %c0_73 = arith.constant 0 : index
    %213 = vector.load %arg3[%c352, %c0_73] : memref<592x128xf32, #tpu.memory_space<vmem>>, vector<16x16xf32>
    %cst_74 = arith.constant dense<0.000000e+00> : vector<2x16xf32>
    %214 = tpu.matmul %212, %213, %cst_74 {dimension_numbers = #tpu.dot_dimension_numbers<[1], [0], [0], [1], [0, 0, 1, 1], [], []>} : vector<2x16xf32>, vector<16x16xf32>, vector<2x16xf32> -> vector<2x16xf32>
    %c9 = arith.constant 9 : index
    %c0_75 = arith.constant 0 : index
    %215 = vector.load %arg4[%c9, %c0_75] : memref<19x128xf32, #tpu.memory_space<vmem>>, vector<1x16xf32>
    %216 = vector.broadcast %215 : vector<1x16xf32> to vector<2x16xf32>
    %217 = arith.addf %214, %216 : vector<2x16xf32>
    %cst_76 = arith.constant 0.000000e+00 : f32
    %218 = vector.broadcast %cst_76 : f32 to vector<2x16xf32>
    %219 = arith.maximumf %217, %218 : vector<2x16xf32>
    %220 = tpu.concatenate %177, %176, %219 in 1 : vector<2x16xf32>, vector<2x32xf32>, vector<2x16xf32> -> vector<2x64xf32>
    %c368 = arith.constant 368 : index
    %c0_77 = arith.constant 0 : index
    %221 = vector.load %arg3[%c368, %c0_77] : memref<592x128xf32, #tpu.memory_space<vmem>>, vector<64x64xf32>
    %cst_78 = arith.constant dense<0.000000e+00> : vector<2x64xf32>
    %222 = tpu.matmul %220, %221, %cst_78 {dimension_numbers = #tpu.dot_dimension_numbers<[1], [0], [0], [1], [0, 0, 1, 1], [], []>} : vector<2x64xf32>, vector<64x64xf32>, vector<2x64xf32> -> vector<2x64xf32>
    %c10 = arith.constant 10 : index
    %c0_79 = arith.constant 0 : index
    %223 = vector.load %arg4[%c10, %c0_79] : memref<19x128xf32, #tpu.memory_space<vmem>>, vector<1x64xf32>
    %224 = vector.broadcast %223 : vector<1x64xf32> to vector<2x64xf32>
    %225 = arith.addf %222, %224 : vector<2x64xf32>
    %cst_80 = arith.constant 0.000000e+00 : f32
    %226 = vector.broadcast %cst_80 : f32 to vector<2x64xf32>
    %227 = arith.maximumf %225, %226 : vector<2x64xf32>
    %c432 = arith.constant 432 : index
    %c0_81 = arith.constant 0 : index
    %228 = vector.load %arg3[%c432, %c0_81] : memref<592x128xf32, #tpu.memory_space<vmem>>, vector<64x32xf32>
    %cst_82 = arith.constant dense<0.000000e+00> : vector<2x32xf32>
    %229 = tpu.matmul %227, %228, %cst_82 {dimension_numbers = #tpu.dot_dimension_numbers<[1], [0], [0], [1], [0, 0, 1, 1], [], []>} : vector<2x64xf32>, vector<64x32xf32>, vector<2x32xf32> -> vector<2x32xf32>
    %c11 = arith.constant 11 : index
    %c0_83 = arith.constant 0 : index
    %230 = vector.load %arg4[%c11, %c0_83] : memref<19x128xf32, #tpu.memory_space<vmem>>, vector<1x32xf32>
    %231 = vector.broadcast %230 : vector<1x32xf32> to vector<2x32xf32>
    %232 = arith.addf %229, %231 : vector<2x32xf32>
    %cst_84 = arith.constant 0.000000e+00 : f32
    %233 = vector.broadcast %cst_84 : f32 to vector<2x32xf32>
    %234 = arith.maximumf %232, %233 : vector<2x32xf32>
    %c496 = arith.constant 496 : index
    %c0_85 = arith.constant 0 : index
    %235 = vector.load %arg3[%c496, %c0_85] : memref<592x128xf32, #tpu.memory_space<vmem>>, vector<32x32xf32>
    %cst_86 = arith.constant dense<0.000000e+00> : vector<2x32xf32>
    %236 = tpu.matmul %234, %235, %cst_86 {dimension_numbers = #tpu.dot_dimension_numbers<[1], [0], [0], [1], [0, 0, 1, 1], [], []>} : vector<2x32xf32>, vector<32x32xf32>, vector<2x32xf32> -> vector<2x32xf32>
    %c12 = arith.constant 12 : index
    %c0_87 = arith.constant 0 : index
    %237 = vector.load %arg4[%c12, %c0_87] : memref<19x128xf32, #tpu.memory_space<vmem>>, vector<1x32xf32>
    %238 = vector.broadcast %237 : vector<1x32xf32> to vector<2x32xf32>
    %239 = arith.addf %236, %238 : vector<2x32xf32>
    %cst_88 = arith.constant 0.000000e+00 : f32
    %240 = vector.broadcast %cst_88 : f32 to vector<2x32xf32>
    %241 = arith.maximumf %239, %240 : vector<2x32xf32>
    %c528 = arith.constant 528 : index
    %c0_89 = arith.constant 0 : index
    %242 = vector.load %arg3[%c528, %c0_89] : memref<592x128xf32, #tpu.memory_space<vmem>>, vector<32x32xf32>
    %cst_90 = arith.constant dense<0.000000e+00> : vector<2x32xf32>
    %243 = tpu.matmul %241, %242, %cst_90 {dimension_numbers = #tpu.dot_dimension_numbers<[1], [0], [0], [1], [0, 0, 1, 1], [], []>} : vector<2x32xf32>, vector<32x32xf32>, vector<2x32xf32> -> vector<2x32xf32>
    %c13 = arith.constant 13 : index
    %c0_91 = arith.constant 0 : index
    %244 = vector.load %arg4[%c13, %c0_91] : memref<19x128xf32, #tpu.memory_space<vmem>>, vector<1x32xf32>
    %245 = vector.broadcast %244 : vector<1x32xf32> to vector<2x32xf32>
    %246 = arith.addf %243, %245 : vector<2x32xf32>
    %cst_92 = arith.constant 0.000000e+00 : f32
    %247 = vector.broadcast %cst_92 : f32 to vector<2x32xf32>
    %248 = arith.maximumf %246, %247 : vector<2x32xf32>
    %c560 = arith.constant 560 : index
    %c0_93 = arith.constant 0 : index
    %249 = vector.load %arg3[%c560, %c0_93] : memref<592x128xf32, #tpu.memory_space<vmem>>, vector<32x16xf32>
    %cst_94 = arith.constant dense<0.000000e+00> : vector<2x16xf32>
    %250 = tpu.matmul %248, %249, %cst_94 {dimension_numbers = #tpu.dot_dimension_numbers<[1], [0], [0], [1], [0, 0, 1, 1], [], []>} : vector<2x32xf32>, vector<32x16xf32>, vector<2x16xf32> -> vector<2x16xf32>
    %c14 = arith.constant 14 : index
    %c0_95 = arith.constant 0 : index
    %251 = vector.load %arg4[%c14, %c0_95] : memref<19x128xf32, #tpu.memory_space<vmem>>, vector<1x16xf32>
    %252 = vector.broadcast %251 : vector<1x16xf32> to vector<2x16xf32>
    %253 = arith.addf %250, %252 : vector<2x16xf32>
    %cst_96 = arith.constant 0.000000e+00 : f32
    %254 = vector.broadcast %cst_96 : f32 to vector<2x16xf32>
    %255 = arith.maximumf %253, %254 : vector<2x16xf32>
    %c17 = arith.constant 17 : index
    %c0_97 = arith.constant 0 : index
    %256 = vector.load %arg4[%c17, %c0_97] : memref<19x128xf32, #tpu.memory_space<vmem>>, vector<1x16xf32>
    %257 = vector.broadcast %256 : vector<1x16xf32> to vector<2x16xf32>
    %258 = arith.mulf %255, %257 : vector<2x16xf32>
    %cst_98 = arith.constant dense<0.000000e+00> : vector<2xf32>
    %259 = vector.multi_reduction <add>, %258, %cst_98 [1] : vector<2x16xf32> to vector<2xf32>
    %260 = vector.shape_cast %259 : vector<2xf32> to vector<2x1xf32>
    %261 = tpu.iota {dimensions = array<i32: 1>} : vector<2x128xi32>
    %c0_i32 = arith.constant 0 : i32
    %262 = vector.broadcast %c0_i32 : i32 to vector<2x128xi32>
    %263 = arith.cmpi eq, %261, %262 : vector<2x128xi32>
    %cst_99 = arith.constant 0.000000e+00 : f32
    %264 = vector.shape_cast %260 : vector<2x1xf32> to vector<2x1xf32>
    %265 = vector.broadcast %264 : vector<2x1xf32> to vector<2x128xf32>
    %266 = vector.broadcast %cst_99 : f32 to vector<2x128xf32>
    %267 = arith.select %263, %265, %266 : vector<2x128xi1>, vector<2x128xf32>
    %c1_i32 = arith.constant 1 : i32
    %268 = vector.broadcast %c1_i32 : i32 to vector<2x128xi32>
    %269 = arith.cmpi eq, %261, %268 : vector<2x128xi32>
    %270 = vector.shape_cast %197 : vector<2x1xf32> to vector<2x1xf32>
    %271 = vector.broadcast %270 : vector<2x1xf32> to vector<2x128xf32>
    %272 = arith.select %269, %271, %267 : vector<2x128xi1>, vector<2x128xf32>
    %c2_i32 = arith.constant 2 : i32
    %273 = vector.broadcast %c2_i32 : i32 to vector<2x128xi32>
    %274 = arith.cmpi eq, %261, %273 : vector<2x128xi32>
    %275 = vector.shape_cast %192 : vector<2x1xf32> to vector<2x1xf32>
    %276 = vector.broadcast %275 : vector<2x1xf32> to vector<2x128xf32>
    %277 = arith.select %274, %276, %272 : vector<2x128xi1>, vector<2x128xf32>
    %c18 = arith.constant 18 : index
    %c0_100 = arith.constant 0 : index
    %278 = vector.load %arg4[%c18, %c0_100] : memref<19x128xf32, #tpu.memory_space<vmem>>, vector<1x128xf32>
    %279 = vector.broadcast %278 : vector<1x128xf32> to vector<2x128xf32>
    %280 = arith.addf %277, %279 : vector<2x128xf32>
    %c0_101 = arith.constant 0 : index
    %c0_102 = arith.constant 0 : index
    %281 = vector.load %arg5[%c0_101, %c0_102] : memref<2x128xf32, #tpu.memory_space<vmem>>, vector<2x128xf32>
    tpu.vector_store %arg5[%c0_101, %c0_102], %280 {strides = array<i32>} : memref<2x128xf32, #tpu.memory_space<vmem>>, vector<2x128xf32>,
    return
  }
  func.func @transform_0(%arg0: i32) -> (i32, i32, i32) {
    %c0_i32 = arith.constant 0 : i32
    %c0_i32_0 = arith.constant 0 : i32
    %c0_i32_1 = arith.constant 0 : i32
    %c0_i32_2 = arith.constant 0 : i32
    return %c0_i32, %c0_i32_0, %c0_i32_1 : i32, i32, i32
  }
  func.func @transform_1(%arg0: i32) -> (i32, i32) {
    %c0_i32 = arith.constant 0 : i32
    %c0_i32_0 = arith.constant 0 : i32
    %c0_i32_1 = arith.constant 0 : i32
    return %c0_i32, %c0_i32_0 : i32, i32
  }
  func.func @transform_2(%arg0: i32) -> (i32, i32) {
    %c0_i32 = arith.constant 0 : i32
    %c0_i32_0 = arith.constant 0 : i32
    %c0_i32_1 = arith.constant 0 : i32
    return %c0_i32, %c0_i32_0 : i32, i32
  }
  func.func @transform_3(%arg0: i32) -> (i32, i32) {
    %c0_i32 = arith.constant 0 : i32
    %c0_i32_0 = arith.constant 0 : i32
    %c0_i32_1 = arith.constant 0 : i32
    return %c0_i32, %c0_i32_0 : i32, i32
  }
  func.func @transform_4(%arg0: i32) -> (i32, i32) {
    %c0_i32 = arith.constant 0 : i32
    %c0_i32_0 = arith.constant 0 : i32
    %c0_i32_1 = arith.constant 0 : i32
    return %c0_i32, %c0_i32_0 : i32, i32
  }
}

</mosaic_0001>

<bundles_post_ra>
// kernel: hierarchy_attn_forward.1
= control target key start
LH: loop header
LB: loop body
LE: loop exit
PB: predicated region body
PF: predicated region fallthrough
CT: control target
= control target key end

     0   :  { %9 = vsyncpa [#allocation3], 0  ;;  %s2257_s15 = smov [#allocation2]   ;;  %s2622_s0 = inlined_call_operand.vmem [shape: f32[2,8,48], index: 0, kind: input, shape index: {}]   ;;  %s2623_s1 = inlined_call_operand.vmem [shape: s32[2,1], index: 1, kind: input, shape index: {}]   ;;  %s2624_s2 = inlined_call_operand.hbm [shape: f32[592,128], index: 2, kind: input, shape index: {}]   ;;  %s2625_s3 = inlined_call_operand.vmem [shape: f32[19,128], index: 3, kind: input, shape index: {}]   ;;  %s2626_s4 = inlined_call_operand.vmem [shape: f32[2,128], index: 4, kind: output, shape index: {}]  }
   0x1   :  { %s19_s16 = sshll.u32 %s2257_s15, 4  ;;  %s20_s16 = int_to_ptr.vmem [resolvable:$true] %s19_s16 }
   0x2   :  { %s2243_s17 = scalar_lea.vmem %s20_s16, 9472  ;;  %p2248_p1 = scmp.lt.s32.totalorder %s20_s16, %s20_s16 }
   0x3   :  { %p2244_p0 = scmp.ne.s32.totalorder %s20_s16, %s2243_s17  ;;  %p2249_p2 = scmp.lt.s32.totalorder %s2243_s17, %s2243_s17 }
   0x5   :  { %p2250_p3 = por %p2249_p2, %p2248_p1 }
   0x7   :  { %p2251_p4 = pnand %p2250_p3, %p2244_p0 }
   0x9   :  { %2254 = shalt.err (!%p2251_p4)
}
   0xa   :  { %s2258_s18 = smov 128   ;;  %s2259_s19 = smov 8  }
   0xb   :  { %25 = dma.hbm_to_vmem [thread:$0]  %s2624_s2, 9472, %s20_s16, [#allocation3], %s2258_s18, %s2258_s18, %s2259_s19  }
   0xc   :  { %2255 = dma.done.wait [#allocation3], 9472  }
   0xd   :  { %2256 = vsyncadd [#allocation3], 4294957824  ;;  %v47_v0 = vld [vmem:[#allocation2 + $0x28] sm:$0xff]  ;;  %v46_v1 = vld [vmem:[#allocation2 + $0x20] sm:$0xff]  ;;  %vm53_vm0 = vcmask 392192   ;;  %v2260_v21 = vmov 0.0   ;;  %v31_v26 = vlaneseq }
   0xe   :  { %1987 = vmatprep.subr.mxu0 %v47_v0  ;;  %v45_v2 = vld [vmem:[#allocation2 + $0x18] sm:$0xff]  ;;  %v40_v3 = vld [vmem:[%s2622_s0] sm:$0xff]  ;;  %v44_v4 = vld [vmem:[#allocation2 + $0x10] sm:$0xff]  ;;  %vm2261_vm1 = vmmov 0   ;;  %v2262_v23 = vmov 0   ;;  %vm144_vm2 = vcmask 261120  }
   0xf   :  { %1988 = vmatpush3.msra.mxu0 %v47_v0  ;;  %1999 = vmatprep.mubr.msk.f32.mxu0 %vm53_vm0, %v40_v3  ;;  %v43_v5 = vld [vmem:[#allocation2 + $0x8] sm:$0xff]  ;;  %v42_v6 = vld [vmem:[#allocation2] sm:$0xff]  ;;  %v298_v8 = vld [vmem:[#allocation2 + $0x58] sm:$0xff]  ;;  %v2340_v27 = vand.u32 127, %v31_v26  ;;  %v2346_v30 = vshrl.u32 %v31_v26, 7  ;;  %vm463_vm6 = vcmask 64512  }
  0x10   :  { %1989 = vmatprep.subr.mxu0 %v46_v1  ;;  %v41_v7 = vld [vmem:[%s2622_s0 + $0x8] sm:$0xff]  ;;  %v297_v9 = vld [vmem:[#allocation2 + $0x50] sm:$0xff]  ;;  %2002 = vmatprep.subr.mxu1 %v298_v8  ;;  %v295_v11 = vld [vmem:[#allocation2 + $0x40] sm:$0xff]  ;;  %s2263_s29 = smov 32   ;;  %s2264_s30 = smov 96   ;;  %vm229_vm8 = vcmask 130048  }
  0x11   :  { %1990 = vmatpush3.msra.mxu0 %v46_v1  ;;  %2003 = vmatpush3.msra.mxu1 %v298_v8  ;;  %v296_v10 = vld [vmem:[#allocation2 + $0x48] sm:$0xff]  ;;  %v294_v12 = vld [vmem:[#allocation2 + $0x38] sm:$0xff]  ;;  %v293_v13 = vld [vmem:[#allocation2 + $0x30] sm:$0xff]  ;;  %v2350_v31 = vsub.s32 0, %v2346_v30  ;;  %v2356_v34 = vsub.s32 1, %v2346_v30  ;;  %s2265_s7 = smov 112  }
  0x12   :  { %1991 = vmatprep.subr.mxu0 %v45_v2  ;;  %2004 = vmatprep.subr.mxu1 %v297_v9  ;;  %v1848_v14 = vld [vmem:[%s2625_s3] ss:$0 sm:$0xff]  ;;  %v1852_v46 = vld [vmem:[%s2625_s3 + $0x2] ss:$0 sm:$0xff]  ;;  %v1851_v0 = vld [vmem:[%s2625_s3 + $0x1] ss:$0 sm:$0xff] }
  0x13   :  { %1992 = vmatpush3.msra.mxu0 %v45_v2  ;;  %2005 = vmatpush3.msra.mxu1 %v297_v9  ;;  %v33_v22 = vld [vmem:[%s2623_s1] sm:$0x3]  ;;  %vm162_vm9 = vcmask 1041409   ;;  %vm166_vm10 = vcmask 58368   ;;  %vm278_vm11 = vcmask 392448   ;;  %s2266_s14 = smov 80  }
  0x14   :  { %1993 = vmatprep.subr.mxu0 %v44_v4  ;;  %2006 = vmatprep.subr.mxu1 %v296_v10  ;;  %s2267_s17 = smov 16   ;;  %s2268_s18 = smov 48   ;;  %vm1142_vm12 = vcmask 523264   ;;  %vm1110_vm13 = vcmask 123904   ;;  %vm1092_vm14 = vcmask 254976   ;;  %vm1829_vm15 = vcmp.eq.s32.totalorder %v2340_v27, 0 }
  0x15   :  { %1994 = vmatpush3.msra.mxu0 %v44_v4  ;;  %2007 = vmatpush3.msra.mxu1 %v296_v10 }
  0x16   :  { %1995 = vmatprep.subr.mxu0 %v43_v5  ;;  %2008 = vmatprep.subr.mxu1 %v295_v11 }
  0x17   :  { %1996 = vmatpush3.msra.mxu0 %v43_v5  ;;  %2009 = vmatpush3.msra.mxu1 %v295_v11 }
  0x18   :  { %1997 = vmatprep.subr.mxu0 %v42_v6  ;;  %2010 = vmatprep.subr.mxu1 %v294_v12 }
  0x19   :  { %1998 = vmatpush3.msra.mxu0 %v42_v6  ;;  %2011 = vmatpush3.msra.mxu1 %v294_v12 }
  0x1a   :  { %2000 = vmatmul.mubr.msk.f32.vlgmr.msra.gmra.mxu0 %vm53_vm0, %v41_v7  ;;  %2012 = vmatprep.subr.mxu1 %v293_v13 }
  0x1b   :  { %2013 = vmatpush3.msra.mxu1 %v293_v13  ;;  %2017 = vmatprep.subr.mxu0 %v2260_v21 }
  0x1c   :  { %2022 = vmatprep.subr.mxu1 %v2260_v21  ;;  %2019 = vmatprep.mubr.msk.f32.mxu0 %vm2261_vm1, %v2260_v21 }
  0x1d   :  { %2206 = vset.pattern.permute.xlu0 %v2262_v23 }
  0x1e   :  { %35 = vperm.xlu0 %2206, %v33_v22  }
  0x99   :  { %v36_v28 = vpop.permute.xlu0 %35 }
  0x9a   :  { %vm37_vm3 = vcmp.lt.s32.totalorder %v2340_v27, %v36_v28 }
  0x9b   :  { %v2344_v29 = vsel %vm37_vm3, 1.0, %v2260_v21 }
  0x9c   :  { %vm151_vm4 = vcmp.gt.f32.partialorder %v2344_v29, 0.0  ;;  %v648_v55 = vrot.slane %v2344_v29, %v2356_v34  ;;  %v473_v62 = vrot.slane %v2344_v29, %v2350_v31 }
  0x9d   :  { %v456_v32 = vsel %vm151_vm4, 1, %v2262_v23  ;;  %v2401_v23 = vsub.s32 %v2340_v27, %v2346_v30 }
  0x9e   :  { %v460_v33 = vrot.slane %v456_v32, %v2350_v31  ;;  %v636_v36 = vrot.slane %v456_v32, %v2356_v34 }
  0xa0   :  { %vm461_vm5 = vcmp.eq.s32.totalorder %v460_v33, 1  ;;  %vm637_vm7 = vcmp.eq.s32.totalorder %v636_v36, 1 }
  0xda   :  { %v2001_v15 = vpop.f32.mrf.mxu0 }
  0xdb   :  { %v132_v16 = vadd.f32 %v2001_v15, %v1848_v14 }
  0xdc   :  { %v126_v17 = vpop.f32.mrf.mxu0 }
  0xdd   :  { %v127_v18 = vadd.f32 %v1848_v14, %v126_v17 }
  0xdf   :  { %2207 = vtanh.f32 %v127_v18 }
  0xe0   :  { %2209 = vtanh.f32 %v132_v16 }
  0xec   :  { %v2308_v19 = vpop.eup %2207 }
  0xed   :  { %v2310_v20 = vpop.eup %2209  ;;  %2014 = vmatprep.mubr.msk.f32.mxu1 %vm53_vm0, %v2308_v19  ;;  %v142_v4 = vmul.f32 %v2308_v19, %v1851_v0 }
  0xee   :  { %2015 = vmatmul.mubr.msk.f32.vlgmr.msra.gmra.mxu1 %vm53_vm0, %v2310_v20  ;;  %v143_v2 = vmul.f32 %v2310_v20, %v1851_v0 }
  0xef   :  { %2024 = vmatprep.mubr.msk.f32.mxu1 %vm2261_vm1, %v2260_v21  ;;  %v145_v5 = vsel %vm144_vm2, %v142_v4, 0.0 }
  0xf0   :  { %v148_v3 = vsel %vm144_vm2, %v143_v2, 0.0 }
 0x1ae   :  { %v2325_v24 = vpop.f32.mrf.mxu1 }
 0x1af   :  { %v733_v6 = vmul.f32 %v2310_v20, %v2325_v24 }
 0x1b0   :  { %v2327_v25 = vpop.f32.mrf.mxu1 }
 0x1b1   :  { %2018 = vmatpush3.xpose.msk.msra.mxu0 %vm144_vm2, %v2327_v25 }
 0x1b2   :  { %2027 = vmatprep.subr.mxu0 %v2260_v21 }
 0x1b4   :  { %2020 = vmatmul.mubr.msk.f32.vlgmr.msra.gmra.mxu0 %vm144_vm2, %v2308_v19 }
 0x1b5   :  { %2028 = vmatpush3.xpose.msk.msra.mxu0 %vm144_vm2, %v2325_v24  ;;  %2029 = vmatprep.mubr.msk.f32.mxu0 %vm2261_vm1, %v2260_v21 }
 0x1b8   :  { %2030 = vmatmul.mubr.msk.f32.vlgmr.msra.gmra.mxu0 %vm144_vm2, %v2310_v20 }
 0x274   :  { %v451_v35 = vpop.f32.mrf.mxu0 }
 0x275   :  { %v455_v37 = vmul.f32 0.17677669, %v451_v35 }
 0x276   :  { %v2021_v38 = vpop.f32.mrf.mxu0 }
 0x277   :  { %v462_v39 = vsel %vm461_vm5, %v455_v37, -1e+09 }
 0x278   :  { %v628_v40 = vpop.f32.mrf.mxu0  ;;  %v464_v41 = vsel %vm463_vm6, %v462_v39, -inf }
 0x279   :  { %v632_v42 = vmul.f32 0.17677669, %v628_v40  ;;  %465 = vmax.xlane.f32.xlu0 %v464_v41 }
 0x27a   :  { %v2031_v43 = vpop.f32.mrf.mxu0 }
 0x27b   :  { %v638_v44 = vsel %vm637_vm7, %v632_v42, -1e+09 }
 0x27c   :  { %v639_v45 = vsel %vm463_vm6, %v638_v44, -inf }
 0x27d   :  { %640 = vmax.xlane.f32.xlu1 %v639_v45 }
 0x28e   :  { %216 = vrot.lane.b32.xlu1 %v1852_v46, %s2263_s29 }
 0x28f   :  { %481 = vrot.lane.b32.xlu0 %v2308_v19, %s2264_s30 }
 0x302   :  { %v466_v47 = vpop.xlane.xlu0 %465 }
 0x303   :  { %v467_v57 = vsub.f32 %v462_v39, %v466_v47 }
 0x305   :  { %v468_v60 = vmul.f32 1.442695, %v467_v57 }
 0x306   :  { %v641_v48 = vpop.xlane.xlu1 %640  ;;  %v482_v49 = vpop.permute.xlu0 %481 }
 0x307   :  { %v642_v50 = vsub.f32 %v638_v44, %v641_v48  ;;  %2023 = vmatpush3.msra.mxu1 %v482_v49 }
 0x308   :  { %2032 = vmatprep.subr.mxu1 %v2260_v21 }
 0x309   :  { %v643_v51 = vmul.f32 1.442695, %v642_v50 }
 0x30a   :  { %v217_v52 = vpop.permute.xlu1 %216 }
 0x30b   :  { %2211 = vpow2.f32 %v643_v51  ;;  %v219_v53 = vmul.f32 %v2308_v19, %v217_v52  ;;  %v220_v54 = vmul.f32 %v2310_v20, %v217_v52 }
 0x30c   :  { %2213 = vpow2.f32 %v468_v60  ;;  %v746_v60 = vld [vmem:[#allocation2 + $0x70] sm:$0xff] }
 0x30d   :  { %223 = vrot.lane.b32.xlu1 %v219_v53, %s2264_s30 }
 0x311   :  { %225 = vrot.lane.b32.xlu1 %v220_v54, %s2264_s30 }
 0x318   :  { %v2212_v56 = vpop.eup %2211 }
 0x319   :  { %v649_v58 = vmul.f32 %v2212_v56, %v648_v55  ;;  %v2214_v61 = vpop.eup %2213  ;;  %v747_v56 = vld [vmem:[#allocation2 + $0x78] sm:$0xff] }
 0x31a   :  { %v474_v63 = vmul.f32 %v2214_v61, %v473_v62  ;;  %2037 = vmatprep.subr.mxu0 %v747_v56  ;;  %v745_v61 = vld [vmem:[#allocation2 + $0x68] sm:$0xff]  ;;  %v744_v62 = vld [vmem:[#allocation2 + $0x60] sm:$0xff] }
 0x31b   :  { %v650_v59 = vsel %vm463_vm6, %v649_v58, 0.0  ;;  %2038 = vmatpush3.msra.mxu0 %v747_v56 }
 0x31c   :  { %651 = vadd.xlane.f32.xlu0 %v650_v59  ;;  %v475_v1 = vsel %vm463_vm6, %v474_v63, 0.0  ;;  %2039 = vmatprep.subr.mxu0 %v746_v60 }
 0x31d   :  { %2040 = vmatpush3.msra.mxu0 %v746_v60 }
 0x31e   :  { %2041 = vmatprep.subr.mxu0 %v745_v61 }
 0x31f   :  { %2042 = vmatpush3.msra.mxu0 %v745_v61 }
 0x320   :  { %2043 = vmatprep.subr.mxu0 %v744_v62 }
 0x321   :  { %2044 = vmatpush3.msra.mxu0 %v744_v62 }
 0x322   :  { %2063 = vmatprep.subr.mxu0 %v2260_v21 }
 0x332   :  { %656 = vrot.lane.b32.xlu0 %v2310_v20, %s2264_s30 }
 0x335   :  { %476 = vadd.xlane.f32.xlu1 %v475_v1 }
 0x339   :  { %149 = vadd.xlane.f32.xlu1 %v148_v3 }
 0x351   :  { %146 = vadd.xlane.f32.xlu0 %v145_v5 }
 0x367   :  { %738 = vrot.lane.b32.xlu0 %v733_v6, %s2265_s7 }
 0x37f   :  { %v224_v7 = vpop.permute.xlu1 %223 }
 0x380   :  { %v230_v8 = vsel %vm229_vm8, %v224_v7, 0.0 }
 0x381   :  { %231 = vadd.xlane.f32.xlu1 %v230_v8 }
 0x383   :  { %v226_v9 = vpop.permute.xlu1 %225 }
 0x384   :  { %v233_v10 = vsel %vm229_vm8, %v226_v9, 0.0 }
 0x385   :  { %234 = vadd.xlane.f32.xlu1 %v233_v10 }
 0x3a5   :  { %v652_v11 = vpop.xlane.xlu0 %651 }
 0x3a6   :  { %v653_v13 = vadd.f32 1e-09, %v652_v11  ;;  %v919_v11 = vld [vmem:[#allocation2 + $0xa8] sm:$0xff] }
 0x3a9   :  { %v657_v18 = vpop.permute.xlu0 %656 }
 0x3be   :  { %v477_v12 = vpop.xlane.xlu1 %476 }
 0x3bf   :  { %v478_v14 = vadd.f32 1e-09, %v477_v12 }
 0x3c1   :  { %2215 = vrcp.f32 %v478_v14 }
 0x3c2   :  { %2217 = vrcp.f32 %v653_v13  ;;  %v150_v24 = vpop.xlane.xlu1 %149  ;;  %v918_v13 = vld [vmem:[#allocation2 + $0xa0] sm:$0xff] }
 0x3c3   :  { %v161_v28 = vrot.slane %v150_v24, %v2401_v23  ;;  %v914_v24 = vld [vmem:[#allocation2 + $0x80] sm:$0xff] }
 0x3ce   :  { %v2216_v15 = vpop.eup %2215 }
 0x3cf   :  { %v480_v16 = vmul.f32 %v2216_v15, %v474_v63  ;;  %v2218_v17 = vpop.eup %2217  ;;  %v732_v63 = vmul.f32 %v2308_v19, %v2327_v25  ;;  %v917_v15 = vld [vmem:[#allocation2 + $0x98] sm:$0xff] }
 0x3d0   :  { %v655_v22 = vmul.f32 %v2218_v17, %v649_v58 }
 0x3d1   :  { %2025 = vmatmul.mubr.msk.f32.vlgmr.msra.gmra.mxu1 %vm463_vm6, %v480_v16 }
 0x3d2   :  { %2033 = vmatpush3.msra.mxu1 %v657_v18  ;;  %2034 = vmatprep.mubr.msk.f32.mxu1 %vm2261_vm1, %v2260_v21  ;;  %v916_v18 = vld [vmem:[#allocation2 + $0x90] sm:$0xff] }
 0x3d3   :  { %2048 = vmatprep.subr.mxu1 %v2260_v21 }
 0x3d5   :  { %2035 = vmatmul.mubr.msk.f32.vlgmr.msra.gmra.mxu1 %vm463_vm6, %v655_v22  ;;  %v915_v22 = vld [vmem:[#allocation2 + $0x88] sm:$0xff] }
 0x3d6   :  { %2060 = vmatprep.mubr.msk.f32.mxu1 %vm2261_vm1, %v2260_v21  ;;  %2049 = vmatpush3.msra.mxu1 %v919_v11 }
 0x3d7   :  { %2050 = vmatprep.subr.mxu1 %v2260_v21 }
 0x3d8   :  { %2051 = vmatpush3.msra.mxu1 %v918_v13 }
 0x3d9   :  { %2052 = vmatprep.subr.mxu1 %v2260_v21 }
 0x3da   :  { %v147_v26 = vpop.xlane.xlu0 %146  ;;  %2053 = vmatpush3.msra.mxu1 %v917_v15  ;;  %v1003_v15 = vld [vmem:[#allocation2 + $0xd0] sm:$0xff] }
 0x3db   :  { %v157_v32 = vrot.slane %v147_v26, %v2401_v23  ;;  %2054 = vmatprep.subr.mxu1 %v2260_v21 }
 0x3dc   :  { %2055 = vmatpush3.msra.mxu1 %v916_v18  ;;  %v1000_v18 = vld [vmem:[#allocation2 + $0xb8] sm:$0xff] }
 0x3dd   :  { %v163_v33 = vsel %vm162_vm9, %v161_v28, %v157_v32  ;;  %2056 = vmatprep.subr.mxu1 %v2260_v21 }
 0x3de   :  { %v165_v35 = vsel %vm151_vm4, %v163_v33, -1e+09  ;;  %v739_v8 = vpop.permute.xlu0 %738  ;;  %2057 = vmatpush3.msra.mxu1 %v915_v22  ;;  %v999_v22 = vld [vmem:[#allocation2 + $0xb0] sm:$0xff] }
 0x3df   :  { %v167_v36 = vsel %vm166_vm10, %v165_v35, -inf  ;;  %2058 = vmatprep.subr.mxu1 %v2260_v21 }
 0x3e0   :  { %168 = vmax.xlane.f32.xlu1 %v167_v36  ;;  %2059 = vmatpush3.msra.mxu1 %v914_v24  ;;  %v1865_v24 = vld [vmem:[%s2625_s3 + $0x5] ss:$0 sm:$0xff] }
 0x3e1   :  { %2078 = vmatprep.subr.mxu1 %v2260_v21 }
 0x40a   :  { %v232_v37 = vpop.xlane.xlu1 %231 }
 0x40b   :  { %v241_v30 = vrot.slane %v232_v37, %v2401_v23 }
 0x40e   :  { %v235_v38 = vpop.xlane.xlu1 %234 }
 0x40f   :  { %v245_v39 = vrot.slane %v235_v38, %v2401_v23 }
 0x411   :  { %v246_v40 = vsel %vm162_vm9, %v245_v39, %v241_v30 }
 0x412   :  { %v248_v41 = vsel %vm151_vm4, %v246_v40, -1e+09 }
 0x413   :  { %v249_v42 = vsel %vm166_vm10, %v248_v41, -inf }
 0x414   :  { %250 = vmax.xlane.f32.xlu1 %v249_v42 }
 0x469   :  { %v169_v43 = vpop.xlane.xlu1 %168 }
 0x46a   :  { %v170_v44 = vsub.f32 %v165_v35, %v169_v43 }
 0x46c   :  { %v171_v45 = vmul.f32 1.442695, %v170_v44 }
 0x46e   :  { %2219 = vpow2.f32 %v171_v45 }
 0x47b   :  { %v2220_v46 = vpop.eup %2219 }
 0x47c   :  { %v173_v47 = vmul.f32 %v2220_v46, %v2344_v29 }
 0x47e   :  { %v174_v48 = vsel %vm166_vm10, %v173_v47, 0.0 }
 0x47f   :  { %175 = vadd.xlane.f32.xlu1 %v174_v48 }
 0x491   :  { %v553_v49 = vpop.f32.mrf.mxu1 }
 0x493   :  { %v2026_v50 = vpop.f32.mrf.mxu1 }
 0x495   :  { %v728_v51 = vpop.f32.mrf.mxu1 }
 0x496   :  { %v743_v10 = vsel %vm229_vm8, %v728_v51, %v739_v8 }
 0x497   :  { %v2036_v52 = vpop.f32.mrf.mxu1 }
 0x49d   :  { %v251_v53 = vpop.xlane.xlu1 %250 }
 0x49e   :  { %v252_v54 = vsub.f32 %v248_v41, %v251_v53 }
 0x4a0   :  { %v253_v55 = vmul.f32 1.442695, %v252_v54 }
 0x4a2   :  { %2221 = vpow2.f32 %v253_v55 }
 0x4af   :  { %v2222_v57 = vpop.eup %2221 }
 0x4b0   :  { %v255_v58 = vmul.f32 %v2222_v57, %v2344_v29 }
 0x4b2   :  { %v256_v59 = vsel %vm166_vm10, %v255_v58, 0.0 }
 0x4b3   :  { %257 = vadd.xlane.f32.xlu1 %v256_v59 }
 0x4c4   :  { %736 = vrot.lane.b32.xlu1 %v732_v63, %s2265_s7 }
 0x508   :  { %v176_v0 = vpop.xlane.xlu1 %175 }
 0x509   :  { %v177_v1 = vadd.f32 1e-09, %v176_v0 }
 0x50b   :  { %2223 = vrcp.f32 %v177_v1 }
 0x518   :  { %v2224_v2 = vpop.eup %2223 }
 0x519   :  { %v179_v3 = vmul.f32 %v2224_v2, %v173_v47 }
 0x51b   :  { %v183_v4 = vrot.slane %v179_v3, %v2350_v31  ;;  %v190_v5 = vrot.slane %v179_v3, %v2356_v34  ;;  %v1861_v3 = vld [vmem:[%s2625_s3 + $0x4] ss:$0 sm:$0xff] }
 0x51d   :  { %185 = vbcast.lane.b32.xlu1 %v183_v4, 256 }
 0x521   :  { %192 = vbcast.lane.b32.xlu1 %v190_v5, 256 }
 0x53c   :  { %v258_v6 = vpop.xlane.xlu1 %257 }
 0x53d   :  { %v259_v7 = vadd.f32 1e-09, %v258_v6 }
 0x53f   :  { %2225 = vrcp.f32 %v259_v7 }
 0x540   :  { %v737_v25 = vpop.permute.xlu1 %736 }
 0x541   :  { %v742_v9 = vsel %vm229_vm8, %v553_v49, %v737_v25  ;;  %v1864_v25 = vld [vmem:[%s2625_s3 + $0x3] ss:$0 sm:$0xff] }
 0x542   :  { %2045 = vmatprep.mubr.msk.f32.mxu0 %vm144_vm2, %v742_v9 }
 0x543   :  { %2046 = vmatmul.mubr.msk.f32.vlgmr.msra.gmra.mxu0 %vm144_vm2, %v743_v10 }
 0x544   :  { %2075 = vmatprep.mubr.msk.f32.mxu0 %vm2261_vm1, %v2260_v21 }
 0x54c   :  { %v2226_v12 = vpop.eup %2225 }
 0x54d   :  { %v261_v14 = vmul.f32 %v2226_v12, %v255_v58 }
 0x54f   :  { %v272_v16 = vrot.slane %v261_v14, %v2356_v34  ;;  %v265_v17 = vrot.slane %v261_v14, %v2350_v31  ;;  %v1004_v14 = vld [vmem:[#allocation2 + $0xd8] sm:$0xff] }
 0x550   :  { %2064 = vmatpush3.msra.mxu0 %v1004_v14 }
 0x551   :  { %274 = vbcast.lane.b32.xlu1 %v272_v16, 256  ;;  %267 = vbcast.lane.b32.xlu0 %v265_v17, 256  ;;  %v1002_v16 = vld [vmem:[#allocation2 + $0xc8] sm:$0xff]  ;;  %v1001_v17 = vld [vmem:[#allocation2 + $0xc0] sm:$0xff] }
 0x552   :  { %2065 = vmatprep.subr.mxu0 %v2260_v21 }
 0x553   :  { %2066 = vmatpush3.msra.mxu0 %v1003_v15 }
 0x554   :  { %2067 = vmatprep.subr.mxu0 %v2260_v21 }
 0x555   :  { %2068 = vmatpush3.msra.mxu0 %v1002_v16  ;;  %v1222_v16 = vld [vmem:[#allocation2 + $0x148] sm:$0xff] }
 0x556   :  { %2069 = vmatprep.subr.mxu0 %v2260_v21 }
 0x557   :  { %2070 = vmatpush3.msra.mxu0 %v1001_v17 }
 0x558   :  { %2071 = vmatprep.subr.mxu0 %v2260_v21 }
 0x559   :  { %2072 = vmatpush3.msra.mxu0 %v1000_v18  ;;  %v1221_v18 = vld [vmem:[#allocation2 + $0x140] sm:$0xff] }
 0x55a   :  { %2073 = vmatprep.subr.mxu0 %v2260_v21 }
 0x55b   :  { %2074 = vmatpush3.msra.mxu0 %v999_v22  ;;  %v1220_v22 = vld [vmem:[#allocation2 + $0x138] sm:$0xff] }
 0x55c   :  { %2097 = vmatprep.subr.mxu0 %v2260_v21 }
 0x58f   :  { %v186_v26 = vpop.permute.xlu1 %185 }
 0x590   :  { %v194_v33 = vmul.f32 %v2308_v19, %v186_v26 }
 0x592   :  { %v196_v36 = vsel %vm144_vm2, %v194_v33, 0.0 }
 0x593   :  { %v193_v28 = vpop.permute.xlu1 %192  ;;  %v197_v38 = vrot.slane %v196_v36, 4 }
 0x594   :  { %v195_v32 = vmul.f32 %v2310_v20, %v193_v28 }
 0x595   :  { %v198_v39 = vadd.f32 %v197_v38, %v196_v36 }
 0x596   :  { %v203_v35 = vsel %vm144_vm2, %v195_v32, 0.0 }
 0x597   :  { %v204_v37 = vrot.slane %v203_v35, 4  ;;  %v199_v45 = vrot.slane %v198_v39, 2 }
 0x599   :  { %v205_v30 = vadd.f32 %v204_v37, %v203_v35  ;;  %v200_v51 = vadd.f32 %v199_v45, %v198_v39 }
 0x59b   :  { %v206_v40 = vrot.slane %v205_v30, 2  ;;  %v201_v57 = vrot.slane %v200_v51, 1 }
 0x59d   :  { %v207_v48 = vadd.f32 %v206_v40, %v205_v30  ;;  %v202_v62 = vadd.f32 %v201_v57, %v200_v51  ;;  %v1136_v57 = vld [vmem:[#allocation2 + $0x118] sm:$0xff] }
 0x59f   :  { %v208_v54 = vrot.slane %v207_v48, 1 }
 0x5a1   :  { %v209_v60 = vadd.f32 %v208_v54, %v207_v48 }
 0x5a3   :  { %v907_v0 = vsel %vm162_vm9, %v209_v60, %v202_v62  ;;  %v1131_v60 = vld [vmem:[#allocation2 + $0xf0] sm:$0xff] }
 0x5c3   :  { %v275_v41 = vpop.permute.xlu1 %274  ;;  %v268_v42 = vpop.permute.xlu0 %267 }
 0x5c4   :  { %v277_v43 = vmul.f32 %v2310_v20, %v275_v41  ;;  %v276_v44 = vmul.f32 %v2308_v19, %v268_v42 }
 0x5c6   :  { %v286_v46 = vsel %vm278_vm11, %v277_v43, 0.0  ;;  %v279_v47 = vsel %vm278_vm11, %v276_v44, 0.0 }
 0x5c7   :  { %v287_v49 = vrot.slane %v286_v46, 4  ;;  %v280_v50 = vrot.slane %v279_v47, 4 }
 0x5c9   :  { %v288_v52 = vadd.f32 %v287_v49, %v286_v46  ;;  %v281_v53 = vadd.f32 %v280_v50, %v279_v47 }
 0x5cb   :  { %v289_v55 = vrot.slane %v288_v52, 2  ;;  %v282_v56 = vrot.slane %v281_v53, 2 }
 0x5cd   :  { %v290_v58 = vadd.f32 %v289_v55, %v288_v52  ;;  %v283_v59 = vadd.f32 %v282_v56, %v281_v53  ;;  %v1867_v52 = vld [vmem:[%s2625_s3 + $0x6] ss:$0 sm:$0xff] }
 0x5cf   :  { %v291_v61 = vrot.slane %v290_v58, 1  ;;  %v284_v20 = vrot.slane %v283_v59, 1 }
 0x5d1   :  { %v292_v19 = vadd.f32 %v291_v61, %v290_v58  ;;  %v285_v63 = vadd.f32 %v284_v20, %v283_v59  ;;  %v1135_v58 = vld [vmem:[#allocation2 + $0x110] sm:$0xff]  ;;  %v1134_v59 = vld [vmem:[#allocation2 + $0x108] sm:$0xff] }
 0x5d2   :  { %v1130_v61 = vld [vmem:[#allocation2 + $0xe8] sm:$0xff] }
 0x5d3   :  { %v911_v1 = vsel %vm162_vm9, %v292_v19, %v285_v63 }
 0x5d4   :  { %v913_v2 = vsel %vm144_vm2, %v907_v0, %v911_v1 }
 0x5d5   :  { %2061 = vmatmul.mubr.msk.f32.vlgmr.msra.gmra.mxu1 %vm53_vm0, %v913_v2 }
 0x5d6   :  { %2094 = vmatprep.mubr.msk.f32.mxu1 %vm2261_vm1, %v2260_v21  ;;  %2079 = vmatpush3.msra.mxu1 %v1136_v57 }
 0x5d7   :  { %2080 = vmatprep.subr.mxu1 %v2260_v21 }
 0x5d8   :  { %2081 = vmatpush3.msra.mxu1 %v1135_v58  ;;  %v1875_v58 = vld [vmem:[%s2625_s3 + $0x9] ss:$0 sm:$0xff] }
 0x5d9   :  { %2082 = vmatprep.subr.mxu1 %v2260_v21 }
 0x5da   :  { %2083 = vmatpush3.msra.mxu1 %v1134_v59 }
 0x5db   :  { %2084 = vmatprep.subr.mxu1 %v2260_v21 }
 0x603   :  { %v2047_v4 = vpop.f32.mrf.mxu0 }
 0x604   :  { %v831_v5 = vadd.f32 %v2047_v4, %v1861_v3  ;;  %v1129_v4 = vld [vmem:[#allocation2 + $0xe0] sm:$0xff] }
 0x605   :  { %v825_v6 = vpop.f32.mrf.mxu0 }
 0x606   :  { %2227 = vtanh.f32 %v831_v5  ;;  %v826_v7 = vadd.f32 %v1861_v3, %v825_v6 }
 0x608   :  { %2229 = vtanh.f32 %v826_v7 }
 0x613   :  { %v2457_v8 = vpop.eup %2227 }
 0x614   :  { %v842_v9 = vmul.f32 %v2457_v8, %v1864_v25 }
 0x615   :  { %v2460_v10 = vpop.eup %2229 }
 0x616   :  { %v846_v11 = vsel %vm229_vm8, %v842_v9, 0.0  ;;  %v841_v12 = vmul.f32 %v2460_v10, %v1864_v25 }
 0x617   :  { %847 = vadd.xlane.f32.xlu1 %v846_v11 }
 0x618   :  { %v843_v13 = vsel %vm229_vm8, %v841_v12, 0.0 }
 0x619   :  { %844 = vadd.xlane.f32.xlu0 %v843_v13  ;;  %v1224_v13 = vld [vmem:[#allocation2 + $0x158] sm:$0xff] }
 0x695   :  { %v994_v26 = vpop.f32.mrf.mxu1 }
 0x696   :  { %v995_v28 = vadd.f32 %v1865_v24, %v994_v26  ;;  %v1870_v24 = vld [vmem:[%s2625_s3 + $0x10] ss:$0 sm:$0xff] }
 0x697   :  { %v2062_v32 = vpop.f32.mrf.mxu1 }
 0x698   :  { %v2474_v33 = vmax.f32 %v995_v28, 0.0 }
 0x69a   :  { %1011 = vrot.lane.b32.xlu0 %v2474_v33, %s2266_s14 }
 0x6a0   :  { %v848_v35 = vpop.xlane.xlu1 %847 }
 0x6a1   :  { %v858_v37 = vrot.slane %v848_v35, %v2401_v23 }
 0x6a2   :  { %v845_v36 = vpop.xlane.xlu0 %844 }
 0x6a3   :  { %v854_v38 = vrot.slane %v845_v36, %v2401_v23 }
 0x6a5   :  { %v859_v30 = vsel %vm162_vm9, %v858_v37, %v854_v38  ;;  %v1219_v37 = vld [vmem:[#allocation2 + $0x130] sm:$0xff]  ;;  %v1218_v38 = vld [vmem:[#allocation2 + $0x128] sm:$0xff] }
 0x6a6   :  { %v861_v39 = vsel %vm151_vm4, %v859_v30, -1e+09  ;;  %v1217_v30 = vld [vmem:[#allocation2 + $0x120] sm:$0xff] }
 0x6a7   :  { %v862_v40 = vsel %vm166_vm10, %v861_v39, -inf }
 0x6a8   :  { %863 = vmax.xlane.f32.xlu1 %v862_v40 }
 0x70c   :  { %v1012_v41 = vpop.permute.xlu0 %1011 }
 0x70d   :  { %2076 = vmatmul.mubr.msk.f32.vlgmr.msra.gmra.mxu0 %vm53_vm0, %v1012_v41 }
 0x70e   :  { %2113 = vmatprep.mubr.msk.f32.mxu0 %vm2261_vm1, %v2260_v21  ;;  %2098 = vmatpush3.msra.mxu0 %v1224_v13  ;;  %v1574_v13 = vld [vmem:[#allocation2 + $0x208] sm:$0xff] }
 0x70f   :  { %2099 = vmatprep.subr.mxu0 %v2260_v21 }
 0x731   :  { %v864_v42 = vpop.xlane.xlu1 %863 }
 0x732   :  { %v865_v43 = vsub.f32 %v861_v39, %v864_v42  ;;  %v1871_v39 = vld [vmem:[%s2625_s3 + $0x7] ss:$0 sm:$0xff] }
 0x734   :  { %v866_v44 = vmul.f32 1.442695, %v865_v43 }
 0x736   :  { %2231 = vpow2.f32 %v866_v44  ;;  %v1305_v44 = vld [vmem:[#allocation2 + $0x168] sm:$0xff] }
 0x743   :  { %v2232_v45 = vpop.eup %2231 }
 0x744   :  { %v868_v23 = vmul.f32 %v2232_v45, %v2344_v29  ;;  %v1304_v45 = vld [vmem:[#allocation2 + $0x160] sm:$0xff] }
 0x746   :  { %v869_v46 = vsel %vm166_vm10, %v868_v23, 0.0 }
 0x747   :  { %870 = vadd.xlane.f32.xlu1 %v869_v46 }
 0x7cd   :  { %v1081_v47 = vpop.f32.mrf.mxu0 }
 0x7ce   :  { %v1082_v54 = vadd.f32 %v1867_v52, %v1081_v47  ;;  %v1402_v52 = vld [vmem:[#allocation2 + $0x198] sm:$0xff] }
 0x7cf   :  { %v2077_v48 = vpop.f32.mrf.mxu0 }
 0x7d0   :  { %v871_v49 = vpop.xlane.xlu1 %870  ;;  %v1085_v29 = vmax.f32 %v1082_v54, 0.0  ;;  %v1400_v54 = vld [vmem:[#allocation2 + $0x188] sm:$0xff] }
 0x7d1   :  { %v872_v50 = vadd.f32 1e-09, %v871_v49 }
 0x7d3   :  { %2233 = vrcp.f32 %v872_v50  ;;  %v1404_v50 = vld [vmem:[#allocation2 + $0x1a8] sm:$0xff] }
 0x7e0   :  { %v2234_v51 = vpop.eup %2233 }
 0x7e1   :  { %v874_v53 = vmul.f32 %v2234_v51, %v868_v23  ;;  %v1873_v23 = vld [vmem:[%s2625_s3 + $0x8] ss:$0 sm:$0xff]  ;;  %v1403_v51 = vld [vmem:[#allocation2 + $0x1a0] sm:$0xff] }
 0x7e3   :  { %v885_v55 = vrot.slane %v874_v53, %v2356_v34  ;;  %v878_v56 = vrot.slane %v874_v53, %v2350_v31  ;;  %v1133_v31 = vld [vmem:[#allocation2 + $0x100] sm:$0xff]  ;;  %v1132_v34 = vld [vmem:[#allocation2 + $0xf8] sm:$0xff]  ;;  %v1401_v53 = vld [vmem:[#allocation2 + $0x190] sm:$0xff] }
 0x7e4   :  { %2085 = vmatpush3.msra.mxu1 %v1133_v31 }
 0x7e5   :  { %887 = vbcast.lane.b32.xlu0 %v885_v55, 256  ;;  %880 = vbcast.lane.b32.xlu1 %v878_v56, 256  ;;  %v1399_v55 = vld [vmem:[#allocation2 + $0x180] sm:$0xff]  ;;  %v1398_v56 = vld [vmem:[#allocation2 + $0x178] sm:$0xff] }
 0x7e6   :  { %2086 = vmatprep.subr.mxu1 %v2260_v21 }
 0x7e7   :  { %2087 = vmatpush3.msra.mxu1 %v1132_v34 }
 0x7e8   :  { %2088 = vmatprep.subr.mxu1 %v2260_v21 }
 0x7e9   :  { %1115 = vrot.lane.b32.xlu0 %v1085_v29, %s2264_s30  ;;  %2089 = vmatpush3.msra.mxu1 %v1131_v60 }
 0x7ea   :  { %2090 = vmatprep.subr.mxu1 %v2260_v21 }
 0x7eb   :  { %2091 = vmatpush3.msra.mxu1 %v1130_v61 }
 0x7ec   :  { %2092 = vmatprep.subr.mxu1 %v2260_v21 }
 0x7ed   :  { %1118 = vrot.lane.b32.xlu0 %v1085_v29, %s2267_s17  ;;  %2093 = vmatpush3.msra.mxu1 %v1129_v4  ;;  %v1397_v29 = vld [vmem:[#allocation2 + $0x170] sm:$0xff] }
 0x7ee   :  { %2116 = vmatprep.subr.mxu1 %v2260_v21 }
 0x7f1   :  { %1385 = vrot.lane.b32.xlu0 %v2474_v33, %s2264_s30 }
 0x857   :  { %v881_v20 = vpop.permute.xlu1 %880  ;;  %v888_v62 = vpop.permute.xlu0 %887 }
 0x858   :  { %v889_v19 = vmul.f32 %v2460_v10, %v881_v20  ;;  %v890_v63 = vmul.f32 %v2457_v8, %v888_v62  ;;  %v1223_v8 = vld [vmem:[#allocation2 + $0x150] sm:$0xff] }
 0x859   :  { %2100 = vmatpush3.msra.mxu0 %v1223_v8  ;;  %v1877_v8 = vld [vmem:[%s2625_s3 + $0xa] ss:$0 sm:$0xff] }
 0x85a   :  { %v891_v0 = vsel %vm229_vm8, %v889_v19, 0.0  ;;  %v898_v1 = vsel %vm229_vm8, %v890_v63, 0.0  ;;  %2101 = vmatprep.subr.mxu0 %v2260_v21 }
 0x85b   :  { %v892_v2 = vrot.slane %v891_v0, 4  ;;  %v899_v3 = vrot.slane %v898_v1, 4  ;;  %2102 = vmatpush3.msra.mxu0 %v1222_v16  ;;  %v1116_v26 = vpop.permute.xlu0 %1115 }
 0x85c   :  { %2103 = vmatprep.subr.mxu0 %v2260_v21 }
 0x85d   :  { %v893_v5 = vadd.f32 %v892_v2, %v891_v0  ;;  %v900_v6 = vadd.f32 %v899_v3, %v898_v1  ;;  %2104 = vmatpush3.msra.mxu0 %v1221_v18  ;;  %v1869_v1 = vld [vmem:[%s2625_s3 + $0xf] ss:$0 sm:$0xff]  ;;  %v1573_v18 = vld [vmem:[#allocation2 + $0x200] sm:$0xff] }
 0x85e   :  { %2105 = vmatprep.subr.mxu0 %v2260_v21  ;;  %v1091_v4 = vmul.f32 %v1869_v1, %v2474_v33 }
 0x85f   :  { %v894_v7 = vrot.slane %v893_v5, 2  ;;  %v901_v25 = vrot.slane %v900_v6, 2  ;;  %2106 = vmatpush3.msra.mxu0 %v1220_v22  ;;  %v1119_v28 = vpop.permute.xlu0 %1118  ;;  %v1572_v22 = vld [vmem:[#allocation2 + $0x1f8] sm:$0xff] }
 0x860   :  { %2107 = vmatprep.subr.mxu0 %v2260_v21  ;;  %v1127_v32 = vsel %vm229_vm8, %v1116_v26, %v1119_v28  ;;  %v1657_v26 = vld [vmem:[#allocation2 + $0x228] sm:$0xff] }
 0x861   :  { %v895_v9 = vadd.f32 %v894_v7, %v893_v5  ;;  %v902_v11 = vadd.f32 %v901_v25, %v900_v6  ;;  %2108 = vmatpush3.msra.mxu0 %v1219_v37  ;;  %v1093_v5 = vsel %vm1092_vm14, %v1091_v4, 0.0  ;;  %v1491_v6 = vld [vmem:[#allocation2 + $0x1e8] sm:$0xff]  ;;  %v1490_v7 = vld [vmem:[#allocation2 + $0x1e0] sm:$0xff]  ;;  %v1489_v25 = vld [vmem:[#allocation2 + $0x1d8] sm:$0xff] }
 0x862   :  { %2109 = vmatprep.subr.mxu0 %v2260_v21  ;;  %v1879_v28 = vld [vmem:[%s2625_s3 + $0xb] ss:$0 sm:$0xff] }
 0x863   :  { %v896_v12 = vrot.slane %v895_v9, 1  ;;  %v903_v10 = vrot.slane %v902_v11, 1  ;;  %2110 = vmatpush3.msra.mxu0 %v1218_v38  ;;  %v1386_v62 = vpop.permute.xlu0 %1385  ;;  %v1656_v38 = vld [vmem:[#allocation2 + $0x220] sm:$0xff] }
 0x864   :  { %2111 = vmatprep.subr.mxu0 %v2260_v21 }
 0x865   :  { %v897_v14 = vadd.f32 %v896_v12, %v895_v9  ;;  %v904_v15 = vadd.f32 %v903_v10, %v902_v11  ;;  %2112 = vmatpush3.msra.mxu0 %v1217_v30  ;;  %v1488_v9 = vld [vmem:[#allocation2 + $0x1d0] sm:$0xff]  ;;  %v1487_v11 = vld [vmem:[#allocation2 + $0x1c8] sm:$0xff]  ;;  %v1485_v12 = vld [vmem:[#allocation2 + $0x1b8] sm:$0xff] }
 0x866   :  { %2142 = vmatprep.subr.mxu0 %v2260_v21  ;;  %v1484_v10 = vld [vmem:[#allocation2 + $0x1b0] sm:$0xff]  ;;  %v1655_v30 = vld [vmem:[#allocation2 + $0x218] sm:$0xff] }
 0x867   :  { %v1123_v17 = vsel %vm162_vm9, %v904_v15, %v897_v14 }
 0x868   :  { %1124 = vrot.lane.b32.xlu1 %v1123_v17, %s2268_s18 }
 0x86c   :  { %1388 = vrot.lane.b32.xlu1 %v2474_v33, %s2267_s17 }
 0x870   :  { %1102 = vrot.lane.b32.xlu1 %v1870_v24, %s2263_s29  ;;  %v1571_v24 = vld [vmem:[#allocation2 + $0x1f0] sm:$0xff] }
 0x8da   :  { %v1125_v35 = vpop.permute.xlu1 %1124 }
 0x8db   :  { %v1128_v36 = vsel %vm53_vm0, %v1127_v32, %v1125_v35 }
 0x8dc   :  { %2095 = vmatmul.mubr.msk.f32.vlgmr.msra.gmra.mxu1 %vm1142_vm12, %v1128_v36 }
 0x8dd   :  { %2120 = vmatprep.mubr.msk.f32.mxu1 %vm2261_vm1, %v2260_v21  ;;  %2117 = vmatpush3.msra.mxu1 %v1305_v44 }
 0x8de   :  { %2118 = vmatprep.subr.mxu1 %v2260_v21  ;;  %v1389_v57 = vpop.permute.xlu1 %1388 }
 0x8df   :  { %2119 = vmatpush3.msra.mxu1 %v1304_v45  ;;  %v1395_v19 = vsel %vm229_vm8, %v1386_v62, %v1389_v57 }
 0x8e0   :  { %2123 = vmatprep.subr.mxu1 %v2260_v21 }
 0x8e2   :  { %v1103_v61 = vpop.permute.xlu1 %1102 }
 0x8e3   :  { %v1105_v20 = vmul.f32 %v1103_v61, %v2474_v33  ;;  %v1486_v33 = vld [vmem:[#allocation2 + $0x1c0] sm:$0xff] }
 0x99c   :  { %v1212_v40 = vpop.f32.mrf.mxu1 }
 0x99d   :  { %v1213_v41 = vadd.f32 %v1871_v39, %v1212_v40  ;;  %v1654_v39 = vld [vmem:[#allocation2 + $0x210] sm:$0xff]  ;;  %v1740_v40 = vld [vmem:[#allocation2 + $0x248] sm:$0xff] }
 0x99e   :  { %v2096_v42 = vpop.f32.mrf.mxu1 }
 0x99f   :  { %v1216_v43 = vmax.f32 %v1213_v41, 0.0  ;;  %v1881_v41 = vld [vmem:[%s2625_s3 + $0xc] ss:$0 sm:$0xff] }
 0x9a1   :  { %2114 = vmatmul.mubr.msk.f32.vlgmr.msra.gmra.mxu0 %vm1142_vm12, %v1216_v43 }
 0x9a2   :  { %2158 = vmatprep.mubr.msk.f32.mxu0 %vm2261_vm1, %v2260_v21  ;;  %2143 = vmatpush3.msra.mxu0 %v1491_v6 }
 0x9a3   :  { %2144 = vmatprep.subr.mxu0 %v2260_v21 }
 0x9a4   :  { %2145 = vmatpush3.msra.mxu0 %v1490_v7 }
 0x9a5   :  { %2146 = vmatprep.subr.mxu0 %v2260_v21 }
 0x9a6   :  { %2147 = vmatpush3.msra.mxu0 %v1489_v25 }
 0x9a7   :  { %2148 = vmatprep.subr.mxu0 %v2260_v21 }
 0x9a8   :  { %2149 = vmatpush3.msra.mxu0 %v1488_v9 }
 0x9a9   :  { %2150 = vmatprep.subr.mxu0 %v2260_v21 }
 0x9aa   :  { %2151 = vmatpush3.msra.mxu0 %v1487_v11 }
 0x9ab   :  { %2152 = vmatprep.subr.mxu0 %v2260_v21 }
 0x9ac   :  { %2153 = vmatpush3.msra.mxu0 %v1486_v33 }
 0x9ad   :  { %2154 = vmatprep.subr.mxu0 %v2260_v21 }
 0x9ae   :  { %2155 = vmatpush3.msra.mxu0 %v1485_v12 }
 0x9af   :  { %2156 = vmatprep.subr.mxu0 %v2260_v21 }
 0x9b0   :  { %2157 = vmatpush3.msra.mxu0 %v1484_v10 }
 0x9b1   :  { %2172 = vmatprep.subr.mxu0 %v2260_v21 }
 0xa61   :  { %v1299_v46 = vpop.f32.mrf.mxu0 }
 0xa62   :  { %v1300_v47 = vadd.f32 %v1873_v23, %v1299_v46  ;;  %v1739_v23 = vld [vmem:[#allocation2 + $0x240] sm:$0xff]  ;;  %v1738_v46 = vld [vmem:[#allocation2 + $0x238] sm:$0xff] }
 0xa63   :  { %v2115_v48 = vpop.f32.mrf.mxu0 }
 0xa64   :  { %v1303_v49 = vmax.f32 %v1300_v47, 0.0  ;;  %v1737_v47 = vld [vmem:[#allocation2 + $0x230] sm:$0xff]  ;;  %v1883_v48 = vld [vmem:[%s2625_s3 + $0xd] ss:$0 sm:$0xff] }
 0xa66   :  { %2121 = vmatmul.mubr.msk.f32.vlgmr.msra.gmra.mxu1 %vm229_vm8, %v1303_v49 }
 0xa67   :  { %2139 = vmatprep.mubr.msk.f32.mxu1 %vm2261_vm1, %v2260_v21  ;;  %2124 = vmatpush3.msra.mxu1 %v1404_v50 }
 0xa68   :  { %2125 = vmatprep.subr.mxu1 %v2260_v21 }
 0xa69   :  { %2126 = vmatpush3.msra.mxu1 %v1403_v51 }
 0xa6a   :  { %2127 = vmatprep.subr.mxu1 %v2260_v21 }
 0xa6b   :  { %2128 = vmatpush3.msra.mxu1 %v1402_v52 }
 0xa6c   :  { %2129 = vmatprep.subr.mxu1 %v2260_v21 }
 0xa6d   :  { %2130 = vmatpush3.msra.mxu1 %v1401_v53  ;;  %v1885_v53 = vld [vmem:[%s2625_s3 + $0xe] ss:$0 sm:$0xff] }
 0xa6e   :  { %2131 = vmatprep.subr.mxu1 %v2260_v21 }
 0xa6f   :  { %2132 = vmatpush3.msra.mxu1 %v1400_v54 }
 0xa70   :  { %2133 = vmatprep.subr.mxu1 %v2260_v21 }
 0xa71   :  { %2134 = vmatpush3.msra.mxu1 %v1399_v55 }
 0xa72   :  { %2135 = vmatprep.subr.mxu1 %v2260_v21 }
 0xa73   :  { %2136 = vmatpush3.msra.mxu1 %v1398_v56 }
 0xa74   :  { %2137 = vmatprep.subr.mxu1 %v2260_v21 }
 0xa75   :  { %2138 = vmatpush3.msra.mxu1 %v1397_v29 }
 0xa76   :  { %2161 = vmatprep.subr.mxu1 %v2260_v21 }
 0xb26   :  { %v1380_v59 = vpop.f32.mrf.mxu1 }
 0xb27   :  { %v1381_v31 = vadd.f32 %v1875_v58, %v1380_v59 }
 0xb28   :  { %v2122_v34 = vpop.f32.mrf.mxu1 }
 0xb29   :  { %v1384_v60 = vmax.f32 %v1381_v31, 0.0  ;;  %v1888_v34 = vld [vmem:[%s2625_s3 + $0x12] ss:$0 sm:$0xff] }
 0xb2b   :  { %1392 = vrot.lane.b32.xlu0 %v1384_v60, %s2268_s18 }
 0xb2f   :  { %1107 = vrot.lane.b32.xlu0 %v1105_v20, %s2264_s30 }
 0xb9d   :  { %v1393_v63 = vpop.permute.xlu0 %1392 }
 0xb9e   :  { %v1396_v0 = vsel %vm53_vm0, %v1395_v19, %v1393_v63  ;;  %vm1831_vm0 = vcmp.eq.s32.totalorder %v2340_v27, 1 }
 0xb9f   :  { %2140 = vmatmul.mubr.msk.f32.vlgmr.msra.gmra.mxu1 %vm1142_vm12, %v1396_v0 }
 0xba0   :  { %2169 = vmatprep.mubr.msk.f32.mxu1 %vm2261_vm1, %v2260_v21  ;;  %2162 = vmatpush3.msra.mxu1 %v1574_v13 }
 0xba1   :  { %v1108_v2 = vpop.permute.xlu0 %1107  ;;  %2163 = vmatprep.subr.mxu1 %v2260_v21 }
 0xba2   :  { %v1111_v3 = vsel %vm1110_vm13, %v1108_v2, 0.0  ;;  %2164 = vmatpush3.msra.mxu1 %v1573_v18 }
 0xba3   :  { %1112 = vadd.xlane.f32.xlu0 %v1111_v3  ;;  %2165 = vmatprep.subr.mxu1 %v2260_v21 }
 0xba4   :  { %2166 = vmatpush3.msra.mxu1 %v1572_v22 }
 0xba5   :  { %2167 = vmatprep.subr.mxu1 %v2260_v21 }
 0xba6   :  { %2168 = vmatpush3.msra.mxu1 %v1571_v24 }
 0xba7   :  { %1094 = vadd.xlane.f32.xlu0 %v1093_v5  ;;  %2183 = vmatprep.subr.mxu1 %v2260_v21 }
 0xc2c   :  { %v1113_v59 = vpop.xlane.xlu0 %1112 }
 0xc30   :  { %v1095_v61 = vpop.xlane.xlu0 %1094 }
 0xc5f   :  { %v1479_v14 = vpop.f32.mrf.mxu1 }
 0xc60   :  { %v1480_v15 = vadd.f32 %v1877_v8, %v1479_v14 }
 0xc61   :  { %v2141_v16 = vpop.f32.mrf.mxu1 }
 0xc62   :  { %v1483_v17 = vmax.f32 %v1480_v15, 0.0 }
 0xc64   :  { %2159 = vmatmul.mubr.msk.f32.vlgmr.msra.gmra.mxu0 %vm1142_vm12, %v1483_v17 }
 0xc65   :  { %2180 = vmatprep.mubr.msk.f32.mxu0 %vm2261_vm1, %v2260_v21  ;;  %2173 = vmatpush3.msra.mxu0 %v1657_v26 }
 0xc66   :  { %2174 = vmatprep.subr.mxu0 %v2260_v21 }
 0xc67   :  { %2175 = vmatpush3.msra.mxu0 %v1656_v38 }
 0xc68   :  { %2176 = vmatprep.subr.mxu0 %v2260_v21 }
 0xc69   :  { %2177 = vmatpush3.msra.mxu0 %v1655_v30 }
 0xc6a   :  { %2178 = vmatprep.subr.mxu0 %v2260_v21 }
 0xc6b   :  { %2179 = vmatpush3.msra.mxu0 %v1654_v39 }
 0xd24   :  { %v1566_v32 = vpop.f32.mrf.mxu0 }
 0xd25   :  { %v1567_v35 = vadd.f32 %v1879_v28, %v1566_v32 }
 0xd26   :  { %v2160_v36 = vpop.f32.mrf.mxu0 }
 0xd27   :  { %v1570_v37 = vmax.f32 %v1567_v35, 0.0 }
 0xd29   :  { %2170 = vmatmul.mubr.msk.f32.vlgmr.msra.gmra.mxu1 %vm144_vm2, %v1570_v37 }
 0xd2a   :  { %2191 = vmatprep.mubr.msk.f32.mxu1 %vm2261_vm1, %v2260_v21  ;;  %2184 = vmatpush3.msra.mxu1 %v1740_v40  ;;  %vm1833_vm1 = vcmp.eq.s32.totalorder %v2340_v27, 2 }
 0xd2b   :  { %2185 = vmatprep.subr.mxu1 %v2260_v21 }
 0xd2c   :  { %2186 = vmatpush3.msra.mxu1 %v1739_v23 }
 0xd2d   :  { %2187 = vmatprep.subr.mxu1 %v2260_v21 }
 0xd2e   :  { %2188 = vmatpush3.msra.mxu1 %v1738_v46 }
 0xd2f   :  { %2189 = vmatprep.subr.mxu1 %v2260_v21  ;;  %v1887_v21 = vld [vmem:[%s2625_s3 + $0x11] ss:$0 sm:$0xff] }
 0xd30   :  { %2190 = vmatpush3.msra.mxu1 %v1737_v47 }
 0xde9   :  { %v1649_v42 = vpop.f32.mrf.mxu1 }
 0xdea   :  { %v1650_v43 = vadd.f32 %v1881_v41, %v1649_v42 }
 0xdeb   :  { %v2171_v44 = vpop.f32.mrf.mxu1 }
 0xdec   :  { %v1653_v45 = vmax.f32 %v1650_v43, 0.0 }
 0xdee   :  { %2181 = vmatmul.mubr.msk.f32.vlgmr.msra.gmra.mxu0 %vm144_vm2, %v1653_v45 }
 0xeae   :  { %v1732_v49 = vpop.f32.mrf.mxu0 }
 0xeaf   :  { %v1733_v50 = vadd.f32 %v1883_v48, %v1732_v49 }
 0xeb0   :  { %v2182_v51 = vpop.f32.mrf.mxu0 }
 0xeb1   :  { %v1736_v52 = vmax.f32 %v1733_v50, 0.0 }
 0xeb3   :  { %2192 = vmatmul.mubr.msk.f32.vlgmr.msra.gmra.mxu1 %vm144_vm2, %v1736_v52 }
 0xf73   :  { %v1815_v54 = vpop.f32.mrf.mxu1 }
 0xf74   :  { %v1816_v55 = vadd.f32 %v1885_v53, %v1815_v54 }
 0xf75   :  { %v2193_v56 = vpop.f32.mrf.mxu1 }
 0xf76   :  { %v1819_v29 = vmax.f32 %v1816_v55, 0.0 }
 0xf78   :  { %v1825_v57 = vmul.f32 %v1887_v21, %v1819_v29 }
 0xf7a   :  { %v1826_v58 = vsel %vm1110_vm13, %v1825_v57, 0.0 }
 0xf7b   :  { %1827 = vadd.xlane.f32.xlu1 %v1826_v58 }
0x1004   :  { %v1828_v31 = vpop.xlane.xlu1 %1827 }
0x1005   :  { %v1830_v60 = vsel %vm1829_vm15, %v1828_v31, 0.0 }
0x1006   :  { %v1832_v20 = vsel %vm1831_vm0, %v1113_v59, %v1830_v60 }
0x1007   :  { %v1834_v62 = vsel %vm1833_vm1, %v1095_v61, %v1832_v20 }
0x1008   :  { %v1840_v19 = vadd.f32 %v1888_v34, %v1834_v62 }
0x100a   :  { %1841 = vst [vmem:[%s2626_s4] sm:$0x3] %v1840_v19 }
0x100b   :  { %1846 = vsyncpa [#allocation3], 1 }

</bundles_post_ra>
